<compile_context>
chip_gen: v7x
topology: tpu7x:2x2x1
jax: 0.10.0
libtpu: 0.0.40
codegen_flags: <defaults>
</compile_context>

<pallas_src>
from functools import partial

import numpy as np
import jax
import jax.numpy as jnp
from jax import lax
from jax.experimental import pallas as pl
from jax.experimental.pallas import tpu as pltpu

# ----------------------------- config ---------------------------------------
FS = 16000
N_FFT = 512
WIN = 400
HOP = 160
N_MELS = 80
N_FREQ = N_FFT // 2 + 1          # 257
HIDDEN = 128
VOCAB = 32                       # includes blank=0
PREEMPH = 0.97

# padded (lane/sublane aligned) dims used inside the fused kernel
K_PAD = 512                      # frame columns; rows 400..511 of the DFT weight are zero
F_PAD = 384                      # 257 freq bins -> 3*128 lanes
M_PAD = 128                      # 80 mel bins -> 128 lanes
V_PAD = 128                      # 32 vocab   -> 128 lanes
NEG_LOGIT = -1e9                 # bias for padded vocab lanes -> exp() == 0 in softmax


# ----------------------------- fused Pallas kernel ---------------------------
def _frontend_kernel(fr_ref, dft_ref, mel_ref, w1_ref, b1_ref, w2_ref, b2_ref, o_ref):
    # (pre-processing folded) STFT: one MXU matmul against the packed [cos | sin] weight.
    ri = jnp.dot(fr_ref[...], dft_ref[...], preferred_element_type=jnp.float32)
    re = ri[:, :F_PAD]
    im = ri[:, F_PAD:]
    power = re * re + im * im                                           # (tm, F_PAD) f32

    # mel filterbank + kaldi-style log compression
    mel = jnp.dot(power.astype(jnp.bfloat16), mel_ref[...],
                  preferred_element_type=jnp.float32)                   # (tm, M_PAD)
    feats = jnp.log(jnp.maximum(mel, 1e-10))

    # 2-layer MLP stand-in for AbsEncoder
    h = jnp.dot(feats.astype(jnp.bfloat16), w1_ref[...],
                preferred_element_type=jnp.float32) + b1_ref[...]
    h = jnp.maximum(h, 0.0)
    logits = jnp.dot(h.astype(jnp.bfloat16), w2_ref[...],
                     preferred_element_type=jnp.float32) + b2_ref[...]  # padded lanes ~ -1e9

    # log_softmax over padded vocab lanes (pads contribute exp(-1e9) == 0)
    m = jnp.max(logits, axis=-1, keepdims=True)
    e = jnp.exp(logits - m)
    s = jnp.sum(e, axis=-1, keepdims=True)
    o_ref[...] = logits - m - jnp.log(s)


def _choose_tile(n_rows):
    """Row tile <=512, sublane aligned, with an even grid of >=2 steps so v7x's two
    TensorCores both get work and per-step pipeline overhead is amortized."""
    grid = max(2, 2 * pl.cdiv(n_rows, 1024))
    tm = max(8, ((pl.cdiv(n_rows, grid) + 7) // 8) * 8)
    return tm, grid


def fused_frontend(frames_p, dft, melfb, w1, b1, w2, b2, tm):
    """frames_p: (N_pad, K_PAD) bf16 raw frames -> log-probs (N_pad, V_PAD) f32."""
    n_pad, k = frames_p.shape
    grid = (n_pad // tm,)
    return pl.pallas_call(
        _frontend_kernel,
        out_shape=jax.ShapeDtypeStruct((n_pad, V_PAD), jnp.float32),
        grid=grid,
        in_specs=[
            pl.BlockSpec((tm, k), lambda i: (i, 0)),                 # frames (streamed)
            pl.BlockSpec((K_PAD, 2 * F_PAD), lambda i: (0, 0)),      # folded cos|sin (resident)
            pl.BlockSpec((F_PAD, M_PAD), lambda i: (0, 0)),          # mel filterbank
            pl.BlockSpec((M_PAD, HIDDEN), lambda i: (0, 0)),         # w1
            pl.BlockSpec((1, HIDDEN), lambda i: (0, 0)),             # b1
            pl.BlockSpec((HIDDEN, V_PAD), lambda i: (0, 0)),         # w2
            pl.BlockSpec((1, V_PAD), lambda i: (0, 0)),              # b2 (padded lanes = -1e9)
        ],
        out_specs=pl.BlockSpec((tm, V_PAD), lambda i: (i, 0)),
        compiler_params=pltpu.CompilerParams(
            dimension_semantics=("parallel",),
            vmem_limit_bytes=32 * 1024 * 1024,
        ),
    )(frames_p, dft, melfb, w1, b1, w2, b2)


# ----------------------------- host-side constants ---------------------------
def povey_window_np(length, power=0.85):
    n = np.arange(length, dtype=np.float64)
    hann = 0.5 - 0.5 * np.cos(2.0 * np.pi * n / (length - 1))
    return hann ** power                                            # float64


def dft_matrices_np(win, n_fft, n_freq):
    n = np.arange(win, dtype=np.float64)[:, None]
    k = np.arange(n_freq, dtype=np.float64)[None, :]
    ang = 2.0 * np.pi * n * k / n_fft
    return np.cos(ang), -np.sin(ang)                                # float64, imag of exp(-i ang)


def mel_filterbank_np(n_fft, n_mels, sr, fmin, fmax):
    def hz2mel(f):
        return 1127.0 * np.log(1.0 + f / 700.0)

    def mel2hz(m):
        return 700.0 * (np.exp(m / 1127.0) - 1.0)

    F = n_fft // 2 + 1
    mel_pts = np.linspace(hz2mel(fmin), hz2mel(fmax), n_mels + 2)
    hz_pts = mel2hz(mel_pts)
    bins = hz_pts / (sr / 2.0) * (F - 1)
    fb = np.zeros((F, n_mels), dtype=np.float32)
    freqs = np.arange(F, dtype=np.float64)
    for m in range(n_mels):
        l, c, r = bins[m], bins[m + 1], bins[m + 2]
        left = (freqs - l) / max(c - l, 1e-8)
        right = (r - freqs) / max(r - c, 1e-8)
        fb[:, m] = np.maximum(0.0, np.minimum(left, right))
    return fb


def build_params(key):
    k1, k2 = jax.random.split(key, 2)

    # Fold DC removal -> preemphasis -> Povey window into the DFT weight (float64 compose).
    # Applied to a column-vector frame x: x' = W @ P @ M_dc @ x ; row-vector form uses A.T.
    dc = np.eye(WIN) - np.full((WIN, WIN), 1.0 / WIN)               # x - mean(x)
    pre = np.eye(WIN)
    pre[np.arange(1, WIN), np.arange(WIN - 1)] = -PREEMPH           # x[i] - p*x[i-1]
    pre[0, 0] = 1.0 - PREEMPH                                       # x[0] - p*x[0]
    A = np.diag(povey_window_np(WIN)) @ pre @ dc                    # (WIN, WIN) float64

    cos_m, sin_m = dft_matrices_np(WIN, N_FFT, N_FREQ)
    dft = np.zeros((K_PAD, 2 * F_PAD), np.float64)                  # [cos | sin], zero padded
    dft[:WIN, :N_FREQ] = A.T @ cos_m
    dft[:WIN, F_PAD:F_PAD + N_FREQ] = A.T @ sin_m

    mel = np.zeros((F_PAD, M_PAD), np.float32)                      # zero rows/cols in padding
    mel[:N_FREQ, :N_MELS] = mel_filterbank_np(N_FFT, N_MELS, FS, 20.0, 8000.0)

    w1 = np.zeros((M_PAD, HIDDEN), np.float32)                      # padded mel rows = 0 so the
    w1[:N_MELS] = 0.1 * np.asarray(                                 # log(1e-10) pad lanes cannot leak
        jax.random.normal(k1, (N_MELS, HIDDEN), jnp.float32))
    b1 = np.zeros((1, HIDDEN), np.float32)

    w2 = np.zeros((HIDDEN, V_PAD), np.float32)
    w2[:, :VOCAB] = 0.1 * np.asarray(
        jax.random.normal(k2, (HIDDEN, VOCAB), jnp.float32))
    b2 = np.full((1, V_PAD), NEG_LOGIT, np.float32)                 # mask padded vocab lanes
    b2[:, :VOCAB] = 0.0

    return {
        "dft": jnp.asarray(dft, jnp.bfloat16),
        "melfb": jnp.asarray(mel, jnp.bfloat16),
        "w1": jnp.asarray(w1, jnp.bfloat16),
        "b1": jnp.asarray(b1),
        "w2": jnp.asarray(w2, jnp.bfloat16),
        "b2": jnp.asarray(b2),
    }


# ----------------------------- JAX glue --------------------------------------
def gather_frames_ch0(audio_bct, n_frames, n_pad):
    """Channel 0 only (ChannelSelector / noSE), kaldi snip-edges framing, gathered
    directly into the kernel's (n_pad, K_PAD) bf16 staging layout.  Columns >= WIN and
    rows >= B*n_frames read clipped/raw samples but hit zero weight rows / get sliced off."""
    B, C, T = audio_bct.shape
    x = audio_bct[:, 0, :].astype(jnp.bfloat16).reshape(-1)         # select channel BEFORE STFT
    rows = jnp.arange(n_pad)
    b = jnp.minimum(rows // n_frames, B - 1)
    f = jnp.where(rows < B * n_frames, rows % n_frames, 0)
    start = b * T + f * HOP
    idx = start[:, None] + jnp.arange(K_PAD)[None, :]
    return jnp.take(x, idx, mode="clip")                            # (n_pad, K_PAD) bf16


@partial(jax.jit, static_argnames=("n_frames", "n_pad", "tm"))
def frontend_jit(audio_bct, params, n_frames, n_pad, tm):
    frames_p = gather_frames_ch0(audio_bct, n_frames, n_pad)
    return fused_frontend(frames_p, params["dft"], params["melfb"],
                          params["w1"], params["b1"],
                          params["w2"], params["b2"], tm)


def ctc_loss_mean(log_probs, labels_flat, input_lengths, target_lengths, blank=0):
    """nn.CTCLoss(reduction='mean') semantics.  log_probs: (T, B, V).
    labels_flat / target_lengths are host numpy (as in the module's labels.cpu());
    input_lengths may be a traced jnp array."""
    T, B, V = log_probs.shape
    tl = np.asarray(target_lengths, dtype=np.int64)
    labels_np = np.asarray(labels_flat, dtype=np.int64)
    L_max = int(tl.max())
    S = 2 * L_max + 1
    offs = np.concatenate([[0], np.cumsum(tl)])
    tgt = np.zeros((B, L_max), dtype=np.int32)
    for b in range(B):
        tgt[b, : tl[b]] = labels_np[offs[b]: offs[b + 1]]
    ext_np = np.full((B, S), blank, dtype=np.int32)
    ext_np[:, 1::2] = tgt
    ext = jnp.asarray(ext_np)
    tl_j = jnp.asarray(tl, jnp.int32)
    il_j = jnp.asarray(input_lengths, jnp.int32)

    NEG = jnp.float32(-1e30)
    s_idx = jnp.arange(S)
    valid = s_idx[None, :] < (2 * tl_j[:, None] + 1)

    idx = jnp.broadcast_to(ext[None, :, :], (T, B, S))
    em = jnp.take_along_axis(log_probs, idx, axis=2)                # (T, B, S)

    ext_shift2 = jnp.concatenate([jnp.full((B, 2), -1, jnp.int32), ext[:, :-2]], axis=1)
    allow2 = (ext != blank) & (ext != ext_shift2)

    alpha0 = jnp.full((B, S), NEG, jnp.float32)
    alpha0 = alpha0.at[:, 0].set(em[0, :, 0])
    alpha0 = alpha0.at[:, 1].set(jnp.where(tl_j > 0, em[0, :, 1], NEG))
    alpha0 = jnp.where(valid, alpha0, NEG)

    def step(alpha, t):
        a0 = alpha
        a1 = jnp.concatenate([jnp.full((B, 1), NEG), alpha[:, :-1]], axis=1)
        a2 = jnp.concatenate([jnp.full((B, 2), NEG), alpha[:, :-2]], axis=1)
        a2 = jnp.where(allow2, a2, NEG)
        new = jnp.logaddexp(jnp.logaddexp(a0, a1), a2) + em[t]
        new = jnp.where(valid, new, NEG)
        alpha = jnp.where((t < il_j)[:, None], new, alpha)
        return alpha, None

    alpha, _ = lax.scan(step, alpha0, jnp.arange(1, T))

    b_idx = jnp.arange(B)
    end1 = alpha[b_idx, 2 * tl_j]
    end2 = jnp.where(tl_j > 0, alpha[b_idx, jnp.maximum(2 * tl_j - 1, 0)], NEG)
    loss_b = -jnp.logaddexp(end1, end2)
    return jnp.mean(loss_b / jnp.maximum(tl_j.astype(jnp.float32), 1.0))


# ----------------------------- full forward ----------------------------------
def am_trainer_forward(params, audio, lx, labels_np, ly_np):
    """audio: (B, T_samples, C) float32; lx: (B,) int; labels_np: flat host ints; ly_np: (B,)."""
    B, T, C = audio.shape
    audio_bct = jnp.transpose(audio, (0, 2, 1))                     # (B, C, T) as in the module

    n_frames = 1 + (T - WIN) // HOP                                 # kaldi snip-edges
    flens = jnp.maximum(1 + (jnp.asarray(lx, jnp.int32) - WIN) // HOP, 0)

    N = B * n_frames
    tm, grid = _choose_tile(N)
    n_pad = tm * grid

    logp_pad = frontend_jit(audio_bct, params,
                            n_frames=n_frames, n_pad=n_pad, tm=tm)  # (n_pad, V_PAD)

    logp = logp_pad[:N, :VOCAB].reshape(B, n_frames, VOCAB)
    logp = jnp.transpose(logp, (1, 0, 2))                           # (T, B, V) as in CTCLoss

    loss = ctc_loss_mean(logp, labels_np, flens, ly_np, blank=0)
    return loss


if __name__ == "__main__":
    key = jax.random.PRNGKey(0)
    k_audio, k_lab, k_params = jax.random.split(key, 3)

    B, C, T_samples = 2, 8, 3200                                    # small but valid shapes
    audio = 0.1 * jax.random.normal(k_audio, (B, T_samples, C), jnp.float32)
    lx = jnp.array([T_samples, T_samples], dtype=jnp.int32)
    ly = np.array([5, 4], dtype=np.int32)
    labels = np.asarray(
        jax.random.randint(k_lab, (int(ly.sum()),), 1, VOCAB, dtype=jnp.int32))

    params = build_params(k_params)

    loss = am_trainer_forward(params, audio, lx, labels, ly)
    loss = jax.block_until_ready(loss)
    assert bool(jnp.isfinite(loss)), "loss is not finite"
    print("KERNEL_OK")
</pallas_src>

<mosaic_0001>
module attributes {stable_mosaic.version = 11 : i64} {
  func.func @_frontend_kernel(%arg0: i32, %arg1: memref<24x512xbf16, #tpu.memory_space<vmem>>, %arg2: memref<512x768xbf16, #tpu.memory_space<vmem>>, %arg3: memref<384x128xbf16, #tpu.memory_space<vmem>>, %arg4: memref<128x128xbf16, #tpu.memory_space<vmem>>, %arg5: memref<1x128xf32, #tpu.memory_space<vmem>>, %arg6: memref<128x128xbf16, #tpu.memory_space<vmem>>, %arg7: memref<1x128xf32, #tpu.memory_space<vmem>>, %arg8: memref<24x128xf32, #tpu.memory_space<vmem>>) attributes {dimension_semantics = [#tpu.dimension_semantics<parallel>], iteration_bounds = array<i64: 2>, scalar_prefetch = 0 : i64, scratch_operands = 0 : i64, tpu.core_type = #tpu.core_type<tc>, window_params = [{transform_indices = @transform_0, window_bounds = array<i64: 24, 512>}, {pipeline_mode = #tpu.pipeline_mode<synchronous>, transform_indices = @transform_1, window_bounds = array<i64: 512, 768>}, {pipeline_mode = #tpu.pipeline_mode<synchronous>, transform_indices = @transform_2, window_bounds = array<i64: 384, 128>}, {pipeline_mode = #tpu.pipeline_mode<synchronous>, transform_indices = @transform_3, window_bounds = array<i64: 128, 128>}, {pipeline_mode = #tpu.pipeline_mode<synchronous>, transform_indices = @transform_4, window_bounds = array<i64: 1, 128>}, {pipeline_mode = #tpu.pipeline_mode<synchronous>, transform_indices = @transform_5, window_bounds = array<i64: 128, 128>}, {pipeline_mode = #tpu.pipeline_mode<synchronous>, transform_indices = @transform_6, window_bounds = array<i64: 1, 128>}, {transform_indices = @transform_7, window_bounds = array<i64: 24, 128>}]} {
    %c0 = arith.constant 0 : index
    %c0_0 = arith.constant 0 : index
    %0 = vector.load %arg1[%c0, %c0_0] : memref<24x512xbf16, #tpu.memory_space<vmem>>, vector<24x512xbf16>
    %c0_1 = arith.constant 0 : index
    %c0_2 = arith.constant 0 : index
    %1 = vector.load %arg2[%c0_1, %c0_2] : memref<512x768xbf16, #tpu.memory_space<vmem>>, vector<512x768xbf16>
    %cst = arith.constant dense<0.000000e+00> : vector<24x768xf32>
    %2 = tpu.matmul %0, %1, %cst {dimension_numbers = #tpu.dot_dimension_numbers<[1], [0], [0], [1], [0, 0, 1, 1], [], []>} : vector<24x512xbf16>, vector<512x768xbf16>, vector<24x768xf32> -> vector<24x768xf32>
    %3 = vector.extract_strided_slice %2 {offsets = [0, 0], sizes = [24, 384], strides = [1, 1]} : vector<24x768xf32> to vector<24x384xf32>
    %4 = vector.extract_strided_slice %2 {offsets = [0, 384], sizes = [24, 384], strides = [1, 1]} : vector<24x768xf32> to vector<24x384xf32>
    %5 = arith.mulf %3, %3 : vector<24x384xf32>
    %6 = arith.mulf %4, %4 : vector<24x384xf32>
    %7 = arith.addf %5, %6 : vector<24x384xf32>
    %8 = arith.truncf %7 : vector<24x384xf32> to vector<24x384xbf16>
    %c0_3 = arith.constant 0 : index
    %c0_4 = arith.constant 0 : index
    %9 = vector.load %arg3[%c0_3, %c0_4] : memref<384x128xbf16, #tpu.memory_space<vmem>>, vector<384x128xbf16>
    %cst_5 = arith.constant dense<0.000000e+00> : vector<24x128xf32>
    %10 = tpu.matmul %8, %9, %cst_5 {dimension_numbers = #tpu.dot_dimension_numbers<[1], [0], [0], [1], [0, 0, 1, 1], [], []>} : vector<24x384xbf16>, vector<384x128xbf16>, vector<24x128xf32> -> vector<24x128xf32>
    %cst_6 = arith.constant 1.000000e-10 : f32
    %11 = vector.broadcast %cst_6 : f32 to vector<24x128xf32>
    %12 = arith.maximumf %10, %11 : vector<24x128xf32>
    %13 = math.log %12 : vector<24x128xf32>
    %14 = arith.truncf %13 : vector<24x128xf32> to vector<24x128xbf16>
    %c0_7 = arith.constant 0 : index
    %c0_8 = arith.constant 0 : index
    %15 = vector.load %arg4[%c0_7, %c0_8] : memref<128x128xbf16, #tpu.memory_space<vmem>>, vector<128x128xbf16>
    %cst_9 = arith.constant dense<0.000000e+00> : vector<24x128xf32>
    %16 = tpu.matmul %14, %15, %cst_9 {dimension_numbers = #tpu.dot_dimension_numbers<[1], [0], [0], [1], [0, 0, 1, 1], [], []>} : vector<24x128xbf16>, vector<128x128xbf16>, vector<24x128xf32> -> vector<24x128xf32>
    %c0_10 = arith.constant 0 : index
    %c0_11 = arith.constant 0 : index
    %17 = vector.load %arg5[%c0_10, %c0_11] : memref<1x128xf32, #tpu.memory_space<vmem>>, vector<1x128xf32>
    %18 = vector.broadcast %17 : vector<1x128xf32> to vector<24x128xf32>
    %19 = arith.addf %16, %18 : vector<24x128xf32>
    %cst_12 = arith.constant 0.000000e+00 : f32
    %20 = vector.broadcast %cst_12 : f32 to vector<24x128xf32>
    %21 = arith.maximumf %19, %20 : vector<24x128xf32>
    %22 = arith.truncf %21 : vector<24x128xf32> to vector<24x128xbf16>
    %c0_13 = arith.constant 0 : index
    %c0_14 = arith.constant 0 : index
    %23 = vector.load %arg6[%c0_13, %c0_14] : memref<128x128xbf16, #tpu.memory_space<vmem>>, vector<128x128xbf16>
    %cst_15 = arith.constant dense<0.000000e+00> : vector<24x128xf32>
    %24 = tpu.matmul %22, %23, %cst_15 {dimension_numbers = #tpu.dot_dimension_numbers<[1], [0], [0], [1], [0, 0, 1, 1], [], []>} : vector<24x128xbf16>, vector<128x128xbf16>, vector<24x128xf32> -> vector<24x128xf32>
    %c0_16 = arith.constant 0 : index
    %c0_17 = arith.constant 0 : index
    %25 = vector.load %arg7[%c0_16, %c0_17] : memref<1x128xf32, #tpu.memory_space<vmem>>, vector<1x128xf32>
    %26 = vector.broadcast %25 : vector<1x128xf32> to vector<24x128xf32>
    %27 = arith.addf %24, %26 : vector<24x128xf32>
    %cst_18 = arith.constant dense<0xFF800000> : vector<24xf32>
    %28 = vector.multi_reduction <maximumf>, %27, %cst_18 [1] : vector<24x128xf32> to vector<24xf32>
    %29 = vector.shape_cast %28 : vector<24xf32> to vector<24x1xf32>
    %30 = vector.broadcast %29 : vector<24x1xf32> to vector<24x128xf32>
    %31 = arith.subf %27, %30 : vector<24x128xf32>
    %32 = math.exp %31 : vector<24x128xf32>
    %cst_19 = arith.constant dense<0.000000e+00> : vector<24xf32>
    %33 = vector.multi_reduction <add>, %32, %cst_19 [1] : vector<24x128xf32> to vector<24xf32>
    %34 = vector.shape_cast %33 : vector<24xf32> to vector<24x1xf32>
    %35 = vector.broadcast %29 : vector<24x1xf32> to vector<24x128xf32>
    %36 = arith.subf %27, %35 : vector<24x128xf32>
    %37 = math.log %34 : vector<24x1xf32>
    %38 = vector.broadcast %37 : vector<24x1xf32> to vector<24x128xf32>
    %39 = arith.subf %36, %38 : vector<24x128xf32>
    %c0_20 = arith.constant 0 : index
    %c0_21 = arith.constant 0 : index
    %40 = vector.load %arg8[%c0_20, %c0_21] : memref<24x128xf32, #tpu.memory_space<vmem>>, vector<24x128xf32>
    tpu.vector_store %arg8[%c0_20, %c0_21], %39 {strides = array<i32>} : memref<24x128xf32, #tpu.memory_space<vmem>>, vector<24x128xf32>,
    return
  }
  func.func @transform_0(%arg0: i32) -> (i32, i32) {
    %c0_i32 = arith.constant 0 : i32
    %c0_i32_0 = arith.constant 0 : i32
    return %arg0, %c0_i32 : i32, i32
  }
  func.func @transform_1(%arg0: i32) -> (i32, i32) {
    %c0_i32 = arith.constant 0 : i32
    %c0_i32_0 = arith.constant 0 : i32
    %c0_i32_1 = arith.constant 0 : i32
    return %c0_i32, %c0_i32_0 : i32, i32
  }
  func.func @transform_2(%arg0: i32) -> (i32, i32) {
    %c0_i32 = arith.constant 0 : i32
    %c0_i32_0 = arith.constant 0 : i32
    %c0_i32_1 = arith.constant 0 : i32
    return %c0_i32, %c0_i32_0 : i32, i32
  }
  func.func @transform_3(%arg0: i32) -> (i32, i32) {
    %c0_i32 = arith.constant 0 : i32
    %c0_i32_0 = arith.constant 0 : i32
    %c0_i32_1 = arith.constant 0 : i32
    return %c0_i32, %c0_i32_0 : i32, i32
  }
  func.func @transform_4(%arg0: i32) -> (i32, i32) {
    %c0_i32 = arith.constant 0 : i32
    %c0_i32_0 = arith.constant 0 : i32
    %c0_i32_1 = arith.constant 0 : i32
    return %c0_i32, %c0_i32_0 : i32, i32
  }
  func.func @transform_5(%arg0: i32) -> (i32, i32) {
    %c0_i32 = arith.constant 0 : i32
    %c0_i32_0 = arith.constant 0 : i32
    %c0_i32_1 = arith.constant 0 : i32
    return %c0_i32, %c0_i32_0 : i32, i32
  }
  func.func @transform_6(%arg0: i32) -> (i32, i32) {
    %c0_i32 = arith.constant 0 : i32
    %c0_i32_0 = arith.constant 0 : i32
    %c0_i32_1 = arith.constant 0 : i32
    return %c0_i32, %c0_i32_0 : i32, i32
  }
  func.func @transform_7(%arg0: i32) -> (i32, i32) {
    %c0_i32 = arith.constant 0 : i32
    %c0_i32_0 = arith.constant 0 : i32
    return %arg0, %c0_i32 : i32, i32
  }
}

</mosaic_0001>

<bundles_post_ra>
// kernel: frontend_jit.1
= control target key start
LH: loop header
LB: loop body
LE: loop exit
PB: predicated region body
PF: predicated region fallthrough
CT: control target
= control target key end

     0   :  { %12 = vsyncpa [#allocation3], 0  ;;  %s4218_s0 = inlined_call_operand.vmem [shape: bf16[48,512], index: 0, kind: input, shape index: {}]   ;;  %s4219_s1 = inlined_call_operand.vmem [shape: bf16[512,768], index: 1, kind: input, shape index: {}]   ;;  %s4220_s2 = inlined_call_operand.vmem [shape: bf16[384,128], index: 2, kind: input, shape index: {}]   ;;  %s4221_s3 = inlined_call_operand.vmem [shape: bf16[128,128], index: 3, kind: input, shape index: {}]   ;;  %s4222_s4 = inlined_call_operand.vmem [shape: f32[1,128], index: 4, kind: input, shape index: {}]   ;;  %s4223_s5 = inlined_call_operand.vmem [shape: bf16[128,128], index: 5, kind: input, shape index: {}]   ;;  %s4224_s6 = inlined_call_operand.vmem [shape: f32[1,128], index: 6, kind: input, shape index: {}]   ;;  %s4225_s7 = inlined_call_operand.hbm [shape: f32[48,128], index: 7, kind: output, shape index: {}]  }
   0x1   :  { %14 = vsyncpa [#allocation3 + $0x1], 0  ;;  %s3366_s24 = smov 0   ;;  %s3368_s25 = smov 0  }
   0x2   :  { %s3370_s26 = smov 0   ;;  %s3372_s27 = smov 0  }
   0x3 LB: > { %s3387_s28 = sadd.s32 4294967295, %s3321_s27   ;;  %s2466_s29 = sadd.s32 4294967294, %s3321_s27   ;;  %s3321_s27 = sphi %s3372_s27, %s4231_s27   ;;  %s3317_s26 = sphi %s3370_s26, %s4230_s26   ;;  %s3313_s25 = sphi %s3368_s25, %s4229_s25   ;;  %s3309_s24 = sphi %s3366_s24, %s4228_s24  }
   0x4   : > { %s3391_s30 = sadd.s32 1, %s3321_s27   ;;  %s179_s8 = sadd.s32 1, %s3317_s26 }
   0x5   : > { %s176_s9 = ssub.s32 %s3321_s27, %s3391_s30  ;;  %p189_p0 = scmp.ne.s32.totalorder %s3317_s26, %s3313_s25 }
   0x6   : > { %p177_p1 = scmp.eq.s32.totalorder %s176_s9, 0  ;;  %p190_p2 = scmp.eq.s32.totalorder %s3387_s28, 1 }
   0x7   : > { %p195_p3 = scmp.ne.s32.totalorder %s3313_s25, %s3309_s24  ;;  %p196_p4 = scmp.eq.s32.totalorder %s2466_s29, 1 }
   0x8   : > { %s3402_s10 = scalar_select %p177_p1, %s3317_s26, %s179_s8  }
   0x9   : > { %p3404_p5 = por %p190_p2, %p189_p0  ;;  %p3408_p6 = por %p196_p4, %p195_p3 }
   0xa   : > { %p2469_p7 = scmp.ge.s32.totalorder %s3321_s27, 1  ;;  %p242_p8 = scmp.lt.s32.totalorder %s3321_s27, 3 }
   0xc   : > { %p243_p9 = pnand %p2469_p7, %p242_p8 }
   0xd   : > { %v2903_v0 = vld [vmem:[%s4219_s1 + $0x4] ss:$24 sps:$4 sm:$0xff] (!%p243_p9)   ;;  %v2907_v2 = vld [vmem:[%s4219_s1] ss:$24 sps:$4 sm:$0xff] (!%p243_p9)   ;;  %v2909_v4 = vld [vmem:[%s4219_s1 + $0x34] ss:$24 sps:$4 sm:$0xff] (!%p243_p9)  }
   0xe   : > { %246 = sbr.rel (%p243_p9) target bundleno = 1529 (0x5f9), region = 48  ;;  %v2905_v1 = vld [vmem:[%s4219_s1 + $0xc] ss:$24 sps:$4 sm:$0xff] (!%p243_p9)   ;;  %1476 = vmatprep.subr.bf16.mxu0 (!%p243_p9), %v2903_v0  ;;  %v2908_v3 = vld [vmem:[%s4219_s1 + $0x8] ss:$24 sps:$4 sm:$0xff] (!%p243_p9)   ;;  %s272_s29 = sand.u32 (!%p243_p9), 1, %s3313_s25  }
   0xf   : > { %1578 = vmatprep.subr.bf16.mxu1 (!%p243_p9), %v2905_v1  ;;  %1477 = vmatpush1.bf16.msra.mxu0 (!%p243_p9), %v2907_v2  ;;  %v2911_v5 = vld [vmem:[%s4219_s1 + $0x3c] ss:$24 sps:$4 sm:$0xff] (!%p243_p9)   ;;  %v2913_v6 = vld [vmem:[%s4219_s1 + $0x30] ss:$24 sps:$4 sm:$0xff] (!%p243_p9)   ;;  %v2917_v9 = vld [vmem:[%s4219_s1 + $0x6c] ss:$24 sps:$4 sm:$0xff] (!%p243_p9)  }
  0x10   : > { %1579 = vmatpush1.bf16.msra.mxu1 (!%p243_p9), %v2908_v3  ;;  %1478 = vmatprep.subr.bf16.mxu0 (!%p243_p9), %v2909_v4  ;;  %v2914_v7 = vld [vmem:[%s4219_s1 + $0x38] ss:$24 sps:$4 sm:$0xff] (!%p243_p9)   ;;  %v2915_v8 = vld [vmem:[%s4219_s1 + $0x64] ss:$24 sps:$4 sm:$0xff] (!%p243_p9)   ;;  %v2920_v11 = vld [vmem:[%s4219_s1 + $0x68] ss:$24 sps:$4 sm:$0xff] (!%p243_p9)  }
  0x11   : > { %1580 = vmatprep.subr.bf16.mxu1 (!%p243_p9), %v2911_v5  ;;  %v2919_v10 = vld [vmem:[%s4219_s1 + $0x60] ss:$24 sps:$4 sm:$0xff] (!%p243_p9)   ;;  %v2921_v12 = vld [vmem:[%s4219_s1 + $0x94] ss:$24 sps:$4 sm:$0xff] (!%p243_p9)   ;;  %v2925_v14 = vld [vmem:[%s4219_s1 + $0x90] ss:$24 sps:$4 sm:$0xff] (!%p243_p9)  }
  0x12   : > { %v2923_v13 = vld [vmem:[%s4219_s1 + $0x9c] ss:$24 sps:$4 sm:$0xff] (!%p243_p9)   ;;  %v2926_v15 = vld [vmem:[%s4219_s1 + $0x98] ss:$24 sps:$4 sm:$0xff] (!%p243_p9)   ;;  %v2929_v17 = vld [vmem:[%s4219_s1 + $0xcc] ss:$24 sps:$4 sm:$0xff] (!%p243_p9)  }
  0x13   : > { %1479 = vmatpush1.bf16.msra.mxu0 (!%p243_p9), %v2913_v6  ;;  %v2927_v16 = vld [vmem:[%s4219_s1 + $0xc4] ss:$24 sps:$4 sm:$0xff] (!%p243_p9)   ;;  %v2931_v18 = vld [vmem:[%s4219_s1 + $0xc0] ss:$24 sps:$4 sm:$0xff] (!%p243_p9)   ;;  %v2933_v20 = vld [vmem:[%s4219_s1 + $0xf4] ss:$24 sps:$4 sm:$0xff] (!%p243_p9)  }
  0x14   : > { %1581 = vmatpush1.bf16.msra.mxu1 (!%p243_p9), %v2914_v7  ;;  %1480 = vmatprep.subr.bf16.mxu0 (!%p243_p9), %v2915_v8  ;;  %v2932_v19 = vld [vmem:[%s4219_s1 + $0xc8] ss:$24 sps:$4 sm:$0xff] (!%p243_p9)   ;;  %v2935_v21 = vld [vmem:[%s4219_s1 + $0xfc] ss:$24 sps:$4 sm:$0xff] (!%p243_p9)   ;;  %v2938_v23 = vld [vmem:[%s4219_s1 + $0xf8] ss:$24 sps:$4 sm:$0xff] (!%p243_p9)  }
  0x15   : > { %1582 = vmatprep.subr.bf16.mxu1 %v2917_v9  ;;  %v2937_v22 = vld [vmem:[%s4219_s1 + $0xf0] ss:$24 sps:$4 sm:$0xff]   ;;  %v2939_v24 = vld [vmem:[%s4219_s1 + $0x124] ss:$24 sps:$4 sm:$0xff]   ;;  %v2943_v26 = vld [vmem:[%s4219_s1 + $0x120] ss:$24 sps:$4 sm:$0xff]  }
  0x16   : > { %v2941_v25 = vld [vmem:[%s4219_s1 + $0x12c] ss:$24 sps:$4 sm:$0xff]   ;;  %v2944_v27 = vld [vmem:[%s4219_s1 + $0x128] ss:$24 sps:$4 sm:$0xff]   ;;  %v2947_v29 = vld [vmem:[%s4219_s1 + $0x15c] ss:$24 sps:$4 sm:$0xff]  }
  0x17   : > { %1481 = vmatpush1.bf16.msra.mxu0 %v2919_v10  ;;  %v2945_v28 = vld [vmem:[%s4219_s1 + $0x154] ss:$24 sps:$4 sm:$0xff]   ;;  %s275_s17 = smul.u32 3, %s3387_s28  ;;  %v2949_v30 = vld [vmem:[%s4219_s1 + $0x150] ss:$24 sps:$4 sm:$0xff]   ;;  %s3323_s19 = smov [#allocation2]  }
  0x18   : > { %1583 = vmatpush1.bf16.msra.mxu1 %v2920_v11  ;;  %1482 = vmatprep.subr.bf16.mxu0 %v2921_v12  ;;  %v2950_v31 = vld [vmem:[%s4219_s1 + $0x158] ss:$24 sps:$4 sm:$0xff]   ;;  %v2951_v32 = vld [vmem:[%s4219_s1 + $0x184] ss:$24 sps:$4 sm:$0xff]   ;;  %v2956_v35 = vld [vmem:[%s4219_s1 + $0x188] ss:$24 sps:$4 sm:$0xff]  }
  0x19   : > { %1584 = vmatprep.subr.bf16.mxu1 %v2923_v13  ;;  %v2953_v33 = vld [vmem:[%s4219_s1 + $0x18c] ss:$24 sps:$4 sm:$0xff]   ;;  %p276_p10 = scmp.lt.s32.totalorder %s275_s17, 5  ;;  %v2955_v34 = vld [vmem:[%s4219_s1 + $0x180] ss:$24 sps:$4 sm:$0xff]   ;;  %s2718_s9 = smul.u32 384, %s3387_s28 }
  0x1a   : > { %v2957_v36 = vld [vmem:[%s4219_s1 + $0x1b4] ss:$24 sps:$4 sm:$0xff]   ;;  %v2961_v38 = vld [vmem:[%s4219_s1 + $0x1b0] ss:$24 sps:$4 sm:$0xff]   ;;  %v2963_v40 = vld [vmem:[%s4219_s1 + $0x1e4] ss:$24 sps:$4 sm:$0xff]  }
  0x1b   : > { %1483 = vmatpush1.bf16.msra.mxu0 %v2925_v14  ;;  %v2959_v37 = vld [vmem:[%s4219_s1 + $0x1bc] ss:$24 sps:$4 sm:$0xff]   ;;  %s4233_s17 = smov (!%p276_p10, %s275_s17), 5  ;;  %v2962_v39 = vld [vmem:[%s4219_s1 + $0x1b8] ss:$24 sps:$4 sm:$0xff]   ;;  %s4173_s18 = scalar_lea.hbm %s4225_s7, %s2718_s9 }
  0x1c   : > { %1585 = vmatpush1.bf16.msra.mxu1 %v2926_v15  ;;  %1484 = vmatprep.subr.bf16.mxu0 %v2927_v16  ;;  %v2965_v41 = vld [vmem:[%s4219_s1 + $0x1ec] ss:$24 sps:$4 sm:$0xff]   ;;  %s2717_s15 = sshll.u32 %s4233_s17, 4  ;;  %v2967_v42 = vld [vmem:[%s4219_s1 + $0x1e0] ss:$24 sps:$4 sm:$0xff]   ;;  %s2861_s17 = smul.u32 24, %s272_s29 }
  0x1d   : > { %1586 = vmatprep.subr.bf16.mxu1 %v2929_v17  ;;  %v2968_v43 = vld [vmem:[%s4219_s1 + $0x1e8] ss:$24 sps:$4 sm:$0xff]   ;;  %v2969_v44 = vld [vmem:[%s4219_s1 + $0x214] ss:$24 sps:$4 sm:$0xff]   ;;  %s3553_s8 = scalar_lea.vmem %s4218_s0, %s2717_s15  ;;  %v2974_v48 = vld [vmem:[%s4219_s1 + $0x218] ss:$24 sps:$4 sm:$0xff]  }
  0x1e   : > { %v2971_v45 = vld [vmem:[%s4219_s1 + $0x21c] ss:$24 sps:$4 sm:$0xff]   ;;  %v2973_v46 = vld [vmem:[%s4219_s1 + $0x210] ss:$24 sps:$4 sm:$0xff]   ;;  %v2977_v50 = vld [vmem:[%s4219_s1 + $0x24c] ss:$24 sps:$4 sm:$0xff]  }
  0x1f   : > { %1485 = vmatpush1.bf16.msra.mxu0 %v2931_v18  ;;  %v3562_v47 = vld [vmem:[%s3553_s8 + $0x4] ss:$16 sps:$4 sm:$0xff]   ;;  %v2979_v51 = vld [vmem:[%s4219_s1 + $0x240] ss:$24 sps:$4 sm:$0xff]   ;;  %v2985_v55 = vld [vmem:[%s4219_s1 + $0x270] ss:$24 sps:$4 sm:$0xff]  }
  0x20   : > { %1587 = vmatpush1.bf16.msra.mxu1 %v2932_v19  ;;  %1486 = vmatprep.subr.bf16.mxu0 %v2933_v20  ;;  %v2975_v49 = vld [vmem:[%s4219_s1 + $0x244] ss:$24 sps:$4 sm:$0xff]   ;;  %v2980_v52 = vld [vmem:[%s4219_s1 + $0x248] ss:$24 sps:$4 sm:$0xff]   ;;  %v2981_v53 = vld [vmem:[%s4219_s1 + $0x274] ss:$24 sps:$4 sm:$0xff]  }
  0x21   : > { %1588 = vmatprep.subr.bf16.mxu1 %v2935_v21  ;;  %1508 = vmatprep.mubr.bf16.mxu0 %v3562_v47  ;;  %v2983_v54 = vld [vmem:[%s4219_s1 + $0x27c] ss:$24 sps:$4 sm:$0xff]   ;;  %v2986_v56 = vld [vmem:[%s4219_s1 + $0x278] ss:$24 sps:$4 sm:$0xff]   ;;  %v2989_v58 = vld [vmem:[%s4219_s1 + $0x2ac] ss:$24 sps:$4 sm:$0xff]  }
  0x22   : > { %1610 = vmatprep.mubr.bf16.mxu1 %v3562_v47  ;;  %v2987_v57 = vld [vmem:[%s4219_s1 + $0x2a4] ss:$24 sps:$4 sm:$0xff]   ;;  %v2991_v59 = vld [vmem:[%s4219_s1 + $0x2a0] ss:$24 sps:$4 sm:$0xff]   ;;  %v2993_v61 = vld [vmem:[%s4219_s1 + $0x2d4] ss:$24 sps:$4 sm:$0xff]  }
  0x23   : > { %1487 = vmatpush1.bf16.msra.mxu0 %v2937_v22  ;;  %v2992_v60 = vld [vmem:[%s4219_s1 + $0x2a8] ss:$24 sps:$4 sm:$0xff]   ;;  %v2995_v62 = vld [vmem:[%s4219_s1 + $0x2dc] ss:$24 sps:$4 sm:$0xff]   ;;  %v2998_v0 = vld [vmem:[%s4219_s1 + $0x2d8] ss:$24 sps:$4 sm:$0xff]  }
  0x24   : > { %1589 = vmatpush1.bf16.msra.mxu1 %v2938_v23  ;;  %1488 = vmatprep.subr.bf16.mxu0 %v2939_v24  ;;  %v2997_v63 = vld [vmem:[%s4219_s1 + $0x2d0] ss:$24 sps:$4 sm:$0xff]   ;;  %v3003_v1 = vld [vmem:[%s4219_s1 + $0x304] ss:$24 sps:$4 sm:$0xff]   ;;  %v3001_v3 = vld [vmem:[%s4219_s1 + $0x300] ss:$24 sps:$4 sm:$0xff]  }
  0x25   : > { %1590 = vmatprep.subr.bf16.mxu1 %v2941_v25  ;;  %v3006_v2 = vld [vmem:[%s4219_s1 + $0x30c] ss:$24 sps:$4 sm:$0xff]   ;;  %v3004_v4 = vld [vmem:[%s4219_s1 + $0x308] ss:$24 sps:$4 sm:$0xff]   ;;  %v3013_v7 = vld [vmem:[%s4219_s1 + $0x33c] ss:$24 sps:$4 sm:$0xff]  }
  0x26   : > { %v3630_v5 = vld [vmem:[%s3553_s8] ss:$16 sps:$4 sm:$0xff]   ;;  %v3010_v6 = vld [vmem:[%s4219_s1 + $0x334] ss:$24 sps:$4 sm:$0xff]   ;;  %v3016_v10 = vld [vmem:[%s4219_s1 + $0x364] ss:$24 sps:$4 sm:$0xff]  }
  0x27   : > { %1489 = vmatpush1.bf16.msra.mxu0 %v2943_v26  ;;  %v3008_v8 = vld [vmem:[%s4219_s1 + $0x330] ss:$24 sps:$4 sm:$0xff]   ;;  %v3019_v11 = vld [vmem:[%s4219_s1 + $0x36c] ss:$24 sps:$4 sm:$0xff]   ;;  %v3014_v12 = vld [vmem:[%s4219_s1 + $0x360] ss:$24 sps:$4 sm:$0xff]  }
  0x28   : > { %1591 = vmatpush1.bf16.msra.mxu1 %v2944_v27  ;;  %1490 = vmatprep.subr.bf16.mxu0 %v2945_v28  ;;  %v3011_v9 = vld [vmem:[%s4219_s1 + $0x338] ss:$24 sps:$4 sm:$0xff]   ;;  %v3017_v13 = vld [vmem:[%s4219_s1 + $0x368] ss:$24 sps:$4 sm:$0xff]   ;;  %v3022_v14 = vld [vmem:[%s4219_s1 + $0x394] ss:$24 sps:$4 sm:$0xff]  }
  0x29   : > { %1592 = vmatprep.subr.bf16.mxu1 %v2947_v29  ;;  %v3025_v15 = vld [vmem:[%s4219_s1 + $0x39c] ss:$24 sps:$4 sm:$0xff]   ;;  %v3020_v16 = vld [vmem:[%s4219_s1 + $0x390] ss:$24 sps:$4 sm:$0xff]   ;;  %v3031_v19 = vld [vmem:[%s4219_s1 + $0x3cc] ss:$24 sps:$4 sm:$0xff]  }
  0x2a   : > { %v3023_v17 = vld [vmem:[%s4219_s1 + $0x398] ss:$24 sps:$4 sm:$0xff]   ;;  %v3028_v18 = vld [vmem:[%s4219_s1 + $0x3c4] ss:$24 sps:$4 sm:$0xff]   ;;  %v3029_v21 = vld [vmem:[%s4219_s1 + $0x3c8] ss:$24 sps:$4 sm:$0xff]  }
  0x2b   : > { %1491 = vmatpush1.bf16.msra.mxu0 %v2949_v30  ;;  %v3026_v20 = vld [vmem:[%s4219_s1 + $0x3c0] ss:$24 sps:$4 sm:$0xff]   ;;  %v3034_v22 = vld [vmem:[%s4219_s1 + $0x3f4] ss:$24 sps:$4 sm:$0xff]   ;;  %v3032_v26 = vld [vmem:[%s4219_s1 + $0x3f0] ss:$24 sps:$4 sm:$0xff]  }
  0x2c   : > { %1593 = vmatpush1.bf16.msra.mxu1 %v2950_v31  ;;  %1492 = vmatprep.subr.bf16.mxu0 %v2951_v32  ;;  %v3037_v23 = vld [vmem:[%s4219_s1 + $0x3fc] ss:$24 sps:$4 sm:$0xff]   ;;  %v288_v24 = vld [vmem:[%s3553_s8 + $0x20] sm:$0xff]  ;;  %v3035_v28 = vld [vmem:[%s4219_s1 + $0x3f8] ss:$24 sps:$4 sm:$0xff]   ;;  %s274_s13 = scalar_lea.vmem [#allocation2], %s2861_s17 }
  0x2d   : > { %1594 = vmatprep.subr.bf16.mxu1 %v2953_v33  ;;  %v3689_v25 = vcombine.high %v288_v24, %v288_v24  ;;  %v3694_v27 = vcombine.low %v288_v24, %v288_v24  ;;  %v3040_v29 = vld [vmem:[%s4219_s1 + $0x424] ss:$24 sps:$4 sm:$0xff]   ;;  %v3038_v31 = vld [vmem:[%s4219_s1 + $0x420] ss:$24 sps:$4 sm:$0xff]   ;;  %v3125_v24 = vld [vmem:[%s4219_s1 + $0x134] ss:$24 sps:$4 sm:$0xff]  }
  0x2e   : > { %v3043_v30 = vld [vmem:[%s4219_s1 + $0x42c] ss:$24 sps:$4 sm:$0xff]   ;;  %v3041_v32 = vld [vmem:[%s4219_s1 + $0x428] ss:$24 sps:$4 sm:$0xff]   ;;  %s2404_s14 = sshll.u32 %s274_s13, 4  ;;  %s4177_s28 = scalar_lea.sflag [#allocation3], %s272_s29  ;;  %s4175_s14 = int_to_ptr.vmem [resolvable:$true] %s2404_s14 }
  0x2f   : > { %1493 = vmatpush1.bf16.msra.mxu0 %v2955_v34  ;;  %v3716_v33 = vld [vmem:[%s3553_s8 + $0xc] ss:$16 sps:$4 sm:$0xff]   ;;  %s3259_s15 = scalar_lea.vmem %s4175_s14, 384  ;;  %s3263_s20 = sshll.u32 %s3323_s19, 4  ;;  %s3264_s20 = int_to_ptr.vmem [resolvable:$false] %s3263_s20 }
  0x30   : > { %1595 = vmatpush1.bf16.msra.mxu1 %v2956_v35  ;;  %1494 = vmatprep.subr.bf16.mxu0 %v2957_v36  ;;  %v3046_v34 = vld [vmem:[%s4219_s1 + $0x454] ss:$24 sps:$4 sm:$0xff]   ;;  %v3044_v36 = vld [vmem:[%s4219_s1 + $0x450] ss:$24 sps:$4 sm:$0xff]   ;;  %p3260_p11 = scmp.ne.s32.totalorder %s4175_s14, %s3259_s15  ;;  %s3265_s21 = scalar_lea.vmem %s3264_s20, 768 }
  0x31   : > { %1596 = vmatprep.subr.bf16.mxu1 %v2959_v37  ;;  %v3049_v35 = vld [vmem:[%s4219_s1 + $0x45c] ss:$24 sps:$4 sm:$0xff]   ;;  %v3047_v37 = vld [vmem:[%s4219_s1 + $0x458] ss:$24 sps:$4 sm:$0xff]   ;;  %p3266_p0 = scmp.lt.s32.totalorder %s4175_s14, %s3264_s20  ;;  %p3267_p1 = scmp.lt.s32.totalorder %s3265_s21, %s3259_s15 }
  0x32   : > { %p3261_p12 = pnand %p3260_p11, %p3404_p5 }
  0x33   : > { %1495 = vmatpush1.bf16.msra.mxu0 %v2961_v38  ;;  %v3052_v38 = vld [vmem:[%s4219_s1 + $0x484] ss:$24 sps:$4 sm:$0xff]   ;;  %p3268_p2 = por %p3267_p1, %p3266_p0 }
  0x34   : > { %1597 = vmatpush1.bf16.msra.mxu1 %v2962_v39  ;;  %1496 = vmatprep.subr.bf16.mxu0 %v2963_v40  ;;  %v3055_v39 = vld [vmem:[%s4219_s1 + $0x48c] ss:$24 sps:$4 sm:$0xff]   ;;  %v3050_v40 = vld [vmem:[%s4219_s1 + $0x480] ss:$24 sps:$4 sm:$0xff]   ;;  %p3262_p13 = pneg %p3261_p12 }
  0x35   : > { %1598 = vmatprep.subr.bf16.mxu1 %v2965_v41  ;;  %v3053_v41 = vld [vmem:[%s4219_s1 + $0x488] ss:$24 sps:$4 sm:$0xff]  }
  0x36   : > { %p3269_p3 = pnand %p3268_p2, %p3262_p13 }
  0x37   : > { %1497 = vmatpush1.bf16.msra.mxu0 %v2967_v42  ;;  %v3058_v42 = vld [vmem:[%s4219_s1 + $0x4b4] ss:$24 sps:$4 sm:$0xff]  }
  0x38   : > { %1599 = vmatpush1.bf16.msra.mxu1 %v2968_v43  ;;  %1498 = vmatprep.subr.bf16.mxu0 %v2969_v44  ;;  %v3061_v43 = vld [vmem:[%s4219_s1 + $0x4bc] ss:$24 sps:$4 sm:$0xff]   ;;  %v3056_v44 = vld [vmem:[%s4219_s1 + $0x4b0] ss:$24 sps:$4 sm:$0xff]  }
  0x39   : > { %1600 = vmatprep.subr.bf16.mxu1 %v2971_v45  ;;  %v3059_v45 = vld [vmem:[%s4219_s1 + $0x4b8] ss:$24 sps:$4 sm:$0xff]  }
  0x3b   : > { %1499 = vmatpush1.bf16.msra.mxu0 %v2973_v46  ;;  %v3064_v46 = vld [vmem:[%s4219_s1 + $0x4e4] ss:$24 sps:$4 sm:$0xff]  }
  0x3c   : > { %1601 = vmatpush1.bf16.msra.mxu1 %v2974_v48  ;;  %1500 = vmatprep.subr.bf16.mxu0 %v2975_v49  ;;  %v3067_v48 = vld [vmem:[%s4219_s1 + $0x4ec] ss:$24 sps:$4 sm:$0xff]   ;;  %v3062_v49 = vld [vmem:[%s4219_s1 + $0x4e0] ss:$24 sps:$4 sm:$0xff]  }
  0x3d   : > { %1602 = vmatprep.subr.bf16.mxu1 %v2977_v50  ;;  %v3065_v50 = vld [vmem:[%s4219_s1 + $0x4e8] ss:$24 sps:$4 sm:$0xff]  }
  0x3f   : > { %1501 = vmatpush1.bf16.msra.mxu0 %v2979_v51  ;;  %v3070_v51 = vld [vmem:[%s4219_s1 + $0x514] ss:$24 sps:$4 sm:$0xff]  }
  0x40   : > { %1603 = vmatpush1.bf16.msra.mxu1 %v2980_v52  ;;  %1502 = vmatprep.subr.bf16.mxu0 %v2981_v53  ;;  %v3073_v52 = vld [vmem:[%s4219_s1 + $0x51c] ss:$24 sps:$4 sm:$0xff]   ;;  %v3068_v53 = vld [vmem:[%s4219_s1 + $0x510] ss:$24 sps:$4 sm:$0xff]  }
  0x41   : > { %1604 = vmatprep.subr.bf16.mxu1 %v2983_v54  ;;  %v3071_v54 = vld [vmem:[%s4219_s1 + $0x518] ss:$24 sps:$4 sm:$0xff]  }
  0x43   : > { %1503 = vmatpush1.bf16.msra.mxu0 %v2985_v55  ;;  %v3076_v55 = vld [vmem:[%s4219_s1 + $0x544] ss:$24 sps:$4 sm:$0xff]  }
  0x44   : > { %1605 = vmatpush1.bf16.msra.mxu1 %v2986_v56  ;;  %1504 = vmatprep.subr.bf16.mxu0 %v2987_v57  ;;  %v3079_v56 = vld [vmem:[%s4219_s1 + $0x54c] ss:$24 sps:$4 sm:$0xff]   ;;  %v3074_v57 = vld [vmem:[%s4219_s1 + $0x540] ss:$24 sps:$4 sm:$0xff]  }
  0x45   : > { %1606 = vmatprep.subr.bf16.mxu1 %v2989_v58  ;;  %v3077_v58 = vld [vmem:[%s4219_s1 + $0x548] ss:$24 sps:$4 sm:$0xff]  }
  0x47   : > { %1505 = vmatpush1.bf16.msra.mxu0 %v2991_v59  ;;  %v3082_v59 = vld [vmem:[%s4219_s1 + $0x574] ss:$24 sps:$4 sm:$0xff]  }
  0x48   : > { %1607 = vmatpush1.bf16.msra.mxu1 %v2992_v60  ;;  %1506 = vmatprep.subr.bf16.mxu0 %v2993_v61  ;;  %v3085_v60 = vld [vmem:[%s4219_s1 + $0x57c] ss:$24 sps:$4 sm:$0xff]   ;;  %v3080_v61 = vld [vmem:[%s4219_s1 + $0x570] ss:$24 sps:$4 sm:$0xff]  }
  0x49   : > { %1608 = vmatprep.subr.bf16.mxu1 %v2995_v62  ;;  %v3083_v62 = vld [vmem:[%s4219_s1 + $0x578] ss:$24 sps:$4 sm:$0xff]  }
  0x4b   : > { %1507 = vmatpush1.bf16.msra.mxu0 %v2997_v63  ;;  %v3090_v63 = vld [vmem:[%s4219_s1 + $0x5a4] ss:$24 sps:$4 sm:$0xff]  }
  0x4c   : > { %1609 = vmatpush1.bf16.msra.mxu1 %v2998_v0  ;;  %1527 = vmatprep.subr.bf16.mxu0 %v3003_v1  ;;  %v3093_v0 = vld [vmem:[%s4219_s1 + $0x5ac] ss:$24 sps:$4 sm:$0xff]   ;;  %v3088_v1 = vld [vmem:[%s4219_s1 + $0x5a0] ss:$24 sps:$4 sm:$0xff]  }
  0x4d   : > { %1629 = vmatprep.subr.bf16.mxu1 %v3006_v2  ;;  %v3091_v2 = vld [vmem:[%s4219_s1 + $0x5a8] ss:$24 sps:$4 sm:$0xff]  }
  0x4e   : > { %1509 = vmatmul.mubr.bf16.vlgmr.msra.gmra.mrb[0].mxu0 %v3630_v5 }
  0x4f   : > { %1611 = vmatmul.mubr.bf16.vlgmr.msra.gmra.mrb[0].mxu1 %v3630_v5  ;;  %1528 = vmatpush1.bf16.msra.mxu0 %v3001_v3  ;;  %v3096_v3 = vld [vmem:[%s4219_s1 + $0x5d4] ss:$24 sps:$4 sm:$0xff]  }
  0x50   : > { %1630 = vmatpush1.bf16.msra.mxu1 %v3004_v4  ;;  %1529 = vmatprep.subr.bf16.mxu0 %v3010_v6  ;;  %v3099_v4 = vld [vmem:[%s4219_s1 + $0x5dc] ss:$24 sps:$4 sm:$0xff]   ;;  %v3094_v6 = vld [vmem:[%s4219_s1 + $0x5d0] ss:$24 sps:$4 sm:$0xff]  }
  0x51   : > { %1631 = vmatprep.subr.bf16.mxu1 %v3013_v7  ;;  %1518 = vmatprep.mubr.bf16.mxu0 %v3689_v25  ;;  %v3097_v7 = vld [vmem:[%s4219_s1 + $0x5d8] ss:$24 sps:$4 sm:$0xff]  }
  0x52   : > { %1620 = vmatprep.mubr.bf16.mxu1 %v3689_v25 }
  0x53   : > { %1530 = vmatpush1.bf16.msra.mxu0 %v3008_v8  ;;  %v3105_v8 = vld [vmem:[%s4219_s1 + $0x14] ss:$24 sps:$4 sm:$0xff]  }
  0x54   : > { %1632 = vmatpush1.bf16.msra.mxu1 %v3011_v9  ;;  %1531 = vmatprep.subr.bf16.mxu0 %v3016_v10  ;;  %v289_v9 = vld [vmem:[%s3553_s8 + $0x28] sm:$0xff] }
  0x55   : > { %1633 = vmatprep.subr.bf16.mxu1 %v3019_v11  ;;  %v3833_v10 = vld [vmem:[%s3553_s8 + $0x8] ss:$16 sps:$4 sm:$0xff]  }
  0x56   : > { %1519 = vmatmul.mubr.bf16.gmra.mrb[4].mxu0 %v3694_v27  ;;  %v3103_v11 = vld [vmem:[%s4219_s1 + $0x10] ss:$24 sps:$4 sm:$0xff]  }
  0x57   : > { %1532 = vmatpush1.bf16.msra.mxu0 %v3014_v12  ;;  %1621 = vmatmul.mubr.bf16.gmra.mrb[4].mxu1 %v3694_v27  ;;  %v3838_v12 = vcombine.high %v289_v9, %v289_v9 }
  0x58   : > { %1634 = vmatpush1.bf16.msra.mxu1 %v3017_v13  ;;  %1533 = vmatprep.subr.bf16.mxu0 %v3022_v14  ;;  %v3108_v13 = vld [vmem:[%s4219_s1 + $0x44] ss:$24 sps:$4 sm:$0xff]   ;;  %v3106_v14 = vld [vmem:[%s4219_s1 + $0x40] ss:$24 sps:$4 sm:$0xff]  }
  0x59   : > { %1635 = vmatprep.subr.bf16.mxu1 %v3025_v15  ;;  %1559 = vmatprep.mubr.bf16.mxu0 %v3716_v33  ;;  %v3113_v15 = vld [vmem:[%s4219_s1 + $0x74] ss:$24 sps:$4 sm:$0xff]  }
  0x5a   : > { %1661 = vmatprep.mubr.bf16.mxu1 %v3716_v33 }
  0x5b   : > { %1534 = vmatpush1.bf16.msra.mxu0 %v3020_v16  ;;  %v3111_v16 = vld [vmem:[%s4219_s1 + $0x70] ss:$24 sps:$4 sm:$0xff]  }
  0x5c   : > { %1636 = vmatpush1.bf16.msra.mxu1 %v3023_v17  ;;  %1535 = vmatprep.subr.bf16.mxu0 %v3028_v18  ;;  %v3856_v17 = vcombine.low %v289_v9, %v289_v9  ;;  %v3116_v18 = vld [vmem:[%s4219_s1 + $0xa4] ss:$24 sps:$4 sm:$0xff]   ;;  %v3186_v9 = vld [vmem:[%s4219_s1 + $0x520] ss:$24 sps:$4 sm:$0xff]  }
  0x5d   : > { %1637 = vmatprep.subr.bf16.mxu1 %v3031_v19  ;;  %v3114_v19 = vld [vmem:[%s4219_s1 + $0xa0] ss:$24 sps:$4 sm:$0xff]  }
  0x5f   : > { %1536 = vmatpush1.bf16.msra.mxu0 %v3026_v20  ;;  %v3119_v20 = vld [vmem:[%s4219_s1 + $0xd4] ss:$24 sps:$4 sm:$0xff]  }
  0x60   : > { %1638 = vmatpush1.bf16.msra.mxu1 %v3029_v21  ;;  %1537 = vmatprep.subr.bf16.mxu0 %v3034_v22  ;;  %v3117_v21 = vld [vmem:[%s4219_s1 + $0xd0] ss:$24 sps:$4 sm:$0xff]   ;;  %v3122_v22 = vld [vmem:[%s4219_s1 + $0x104] ss:$24 sps:$4 sm:$0xff]  }
  0x61   : > { %1639 = vmatprep.subr.bf16.mxu1 %v3037_v23  ;;  %v3120_v23 = vld [vmem:[%s4219_s1 + $0x100] ss:$24 sps:$4 sm:$0xff]  }
  0x63   : > { %1538 = vmatpush1.bf16.msra.mxu0 %v3032_v26  ;;  %v3128_v26 = vld [vmem:[%s4219_s1 + $0x164] ss:$24 sps:$4 sm:$0xff]  }
  0x64   : > { %1640 = vmatpush1.bf16.msra.mxu1 %v3035_v28  ;;  %1539 = vmatprep.subr.bf16.mxu0 %v3040_v29  ;;  %v3126_v28 = vld [vmem:[%s4219_s1 + $0x160] ss:$24 sps:$4 sm:$0xff]   ;;  %v3131_v29 = vld [vmem:[%s4219_s1 + $0x194] ss:$24 sps:$4 sm:$0xff]  }
  0x65   : > { %1641 = vmatprep.subr.bf16.mxu1 %v3043_v30  ;;  %v3129_v30 = vld [vmem:[%s4219_s1 + $0x190] ss:$24 sps:$4 sm:$0xff]  }
  0x67   : > { %1540 = vmatpush1.bf16.msra.mxu0 %v3038_v31  ;;  %v3134_v31 = vld [vmem:[%s4219_s1 + $0x1c4] ss:$24 sps:$4 sm:$0xff]  }
  0x68   : > { %1642 = vmatpush1.bf16.msra.mxu1 %v3041_v32  ;;  %1541 = vmatprep.subr.bf16.mxu0 %v3046_v34  ;;  %v3132_v32 = vld [vmem:[%s4219_s1 + $0x1c0] ss:$24 sps:$4 sm:$0xff]   ;;  %v3137_v34 = vld [vmem:[%s4219_s1 + $0x1f4] ss:$24 sps:$4 sm:$0xff]  }
  0x69   : > { %1643 = vmatprep.subr.bf16.mxu1 %v3049_v35  ;;  %v3135_v35 = vld [vmem:[%s4219_s1 + $0x1f0] ss:$24 sps:$4 sm:$0xff]  }
  0x6b   : > { %1542 = vmatpush1.bf16.msra.mxu0 %v3044_v36  ;;  %v3140_v36 = vld [vmem:[%s4219_s1 + $0x224] ss:$24 sps:$4 sm:$0xff]  }
  0x6c   : > { %1644 = vmatpush1.bf16.msra.mxu1 %v3047_v37  ;;  %1543 = vmatprep.subr.bf16.mxu0 %v3052_v38  ;;  %v3138_v37 = vld [vmem:[%s4219_s1 + $0x220] ss:$24 sps:$4 sm:$0xff]   ;;  %v3143_v38 = vld [vmem:[%s4219_s1 + $0x254] ss:$24 sps:$4 sm:$0xff]  }
  0x6d   : > { %1645 = vmatprep.subr.bf16.mxu1 %v3055_v39  ;;  %v3141_v39 = vld [vmem:[%s4219_s1 + $0x250] ss:$24 sps:$4 sm:$0xff]  }
  0x6f   : > { %1544 = vmatpush1.bf16.msra.mxu0 %v3050_v40  ;;  %v3146_v40 = vld [vmem:[%s4219_s1 + $0x284] ss:$24 sps:$4 sm:$0xff]  }
  0x70   : > { %1646 = vmatpush1.bf16.msra.mxu1 %v3053_v41  ;;  %1545 = vmatprep.subr.bf16.mxu0 %v3058_v42  ;;  %v3144_v41 = vld [vmem:[%s4219_s1 + $0x280] ss:$24 sps:$4 sm:$0xff]   ;;  %v3149_v42 = vld [vmem:[%s4219_s1 + $0x2b4] ss:$24 sps:$4 sm:$0xff]  }
  0x71   : > { %1647 = vmatprep.subr.bf16.mxu1 %v3061_v43  ;;  %v3147_v43 = vld [vmem:[%s4219_s1 + $0x2b0] ss:$24 sps:$4 sm:$0xff]  }
  0x73   : > { %1546 = vmatpush1.bf16.msra.mxu0 %v3056_v44  ;;  %v3152_v44 = vld [vmem:[%s4219_s1 + $0x2e4] ss:$24 sps:$4 sm:$0xff]  }
  0x74   : > { %1648 = vmatpush1.bf16.msra.mxu1 %v3059_v45  ;;  %1547 = vmatprep.subr.bf16.mxu0 %v3064_v46  ;;  %v3150_v45 = vld [vmem:[%s4219_s1 + $0x2e0] ss:$24 sps:$4 sm:$0xff]   ;;  %v3155_v46 = vld [vmem:[%s4219_s1 + $0x314] ss:$24 sps:$4 sm:$0xff]  }
  0x75   : > { %1649 = vmatprep.subr.bf16.mxu1 %v3067_v48  ;;  %v3153_v48 = vld [vmem:[%s4219_s1 + $0x310] ss:$24 sps:$4 sm:$0xff]  }
  0x77   : > { %1548 = vmatpush1.bf16.msra.mxu0 %v3062_v49  ;;  %v3158_v49 = vld [vmem:[%s4219_s1 + $0x344] ss:$24 sps:$4 sm:$0xff]  }
  0x78   : > { %1650 = vmatpush1.bf16.msra.mxu1 %v3065_v50  ;;  %1549 = vmatprep.subr.bf16.mxu0 %v3070_v51  ;;  %v3156_v50 = vld [vmem:[%s4219_s1 + $0x340] ss:$24 sps:$4 sm:$0xff]   ;;  %v3161_v51 = vld [vmem:[%s4219_s1 + $0x374] ss:$24 sps:$4 sm:$0xff]  }
  0x79   : > { %1651 = vmatprep.subr.bf16.mxu1 %v3073_v52  ;;  %v3159_v52 = vld [vmem:[%s4219_s1 + $0x370] ss:$24 sps:$4 sm:$0xff]  }
  0x7b   : > { %1550 = vmatpush1.bf16.msra.mxu0 %v3068_v53  ;;  %v3167_v53 = vld [vmem:[%s4219_s1 + $0x3d4] ss:$24 sps:$4 sm:$0xff]  }
  0x7c   : > { %1652 = vmatpush1.bf16.msra.mxu1 %v3071_v54  ;;  %1551 = vmatprep.subr.bf16.mxu0 %v3076_v55  ;;  %v3165_v54 = vld [vmem:[%s4219_s1 + $0x3d0] ss:$24 sps:$4 sm:$0xff]   ;;  %v3173_v55 = vld [vmem:[%s4219_s1 + $0x434] ss:$24 sps:$4 sm:$0xff]  }
  0x7d   : > { %1653 = vmatprep.subr.bf16.mxu1 %v3079_v56  ;;  %v3171_v56 = vld [vmem:[%s4219_s1 + $0x430] ss:$24 sps:$4 sm:$0xff]  }
  0x7f   : > { %1552 = vmatpush1.bf16.msra.mxu0 %v3074_v57  ;;  %v3176_v57 = vld [vmem:[%s4219_s1 + $0x464] ss:$24 sps:$4 sm:$0xff]  }
  0x80   : > { %1654 = vmatpush1.bf16.msra.mxu1 %v3077_v58  ;;  %1553 = vmatprep.subr.bf16.mxu0 %v3082_v59  ;;  %v3174_v58 = vld [vmem:[%s4219_s1 + $0x460] ss:$24 sps:$4 sm:$0xff]   ;;  %v3179_v59 = vld [vmem:[%s4219_s1 + $0x494] ss:$24 sps:$4 sm:$0xff]  }
  0x81   : > { %1655 = vmatprep.subr.bf16.mxu1 %v3085_v60  ;;  %v3177_v60 = vld [vmem:[%s4219_s1 + $0x490] ss:$24 sps:$4 sm:$0xff]  }
  0x83   : > { %1554 = vmatpush1.bf16.msra.mxu0 %v3080_v61  ;;  %v3182_v61 = vld [vmem:[%s4219_s1 + $0x4c4] ss:$24 sps:$4 sm:$0xff]  }
  0x84   : > { %1656 = vmatpush1.bf16.msra.mxu1 %v3083_v62  ;;  %1555 = vmatprep.subr.bf16.mxu0 %v3090_v63  ;;  %v3180_v62 = vld [vmem:[%s4219_s1 + $0x4c0] ss:$24 sps:$4 sm:$0xff]  }
  0x85   : > { %1657 = vmatprep.subr.bf16.mxu1 %v3093_v0  ;;  %v3201_v63 = vld [vmem:[%s4220_s2 + $0x40] sm:$0xff]  }
  0x86   : > { %v3202_v0 = vld [vmem:[%s4220_s2] sm:$0xff]  }
  0x87   : > { %1556 = vmatpush1.bf16.msra.mxu0 %v3088_v1  ;;  %v3203_v1 = vld [vmem:[%s4220_s2 + $0x48] sm:$0xff]  }
  0x88   : > { %1658 = vmatpush1.bf16.msra.mxu1 %v3091_v2  ;;  %1557 = vmatprep.subr.bf16.mxu0 %v3096_v3  ;;  %v3185_v2 = vld [vmem:[%s4219_s1 + $0x4f4] ss:$24 sps:$4 sm:$0xff]  }
  0x89   : > { %1659 = vmatprep.subr.bf16.mxu1 %v3099_v4  ;;  %v3204_v3 = vld [vmem:[%s4220_s2 + $0x8] sm:$0xff]  }
  0x8a   : > { %v3183_v4 = vld [vmem:[%s4219_s1 + $0x4f0] ss:$24 sps:$4 sm:$0xff]  }
  0x8b   : > { %1558 = vmatpush1.bf16.msra.mxu0 %v3094_v6  ;;  %v3205_v6 = vld [vmem:[%s4220_s2 + $0x50] sm:$0xff]  }
  0x8c   : > { %1660 = vmatpush1.bf16.msra.mxu1 %v3097_v7  ;;  %1680 = vmatprep.subr.bf16.mxu0 %v3105_v8  ;;  %v3188_v7 = vld [vmem:[%s4219_s1 + $0x524] ss:$24 sps:$4 sm:$0xff]   ;;  %v3206_v8 = vld [vmem:[%s4220_s2 + $0x10] sm:$0xff]  }
  0x8d   : > { %2719 = vmatprep.subr.bf16.mxu1 %v3201_v63 }
  0x8e   : > { %1560 = vmatmul.mubr.bf16.vlgmr.msra.gmra.mrb[0].mxu0 %v3833_v10 }
  0x8f   : > { %1662 = vmatmul.mubr.bf16.vlgmr.msra.gmra.mrb[0].mxu1 %v3833_v10  ;;  %1681 = vmatpush1.bf16.msra.mxu0 %v3103_v11  ;;  %v3207_v11 = vld [vmem:[%s4220_s2 + $0x58] sm:$0xff]  }
  0x90   : > { %1569 = vmatprep.mubr.bf16.mxu0 %v3838_v12  ;;  %1682 = vmatprep.subr.bf16.mxu0 %v3108_v13  ;;  %v3191_v13 = vld [vmem:[%s4219_s1 + $0x554] ss:$24 sps:$4 sm:$0xff]  }
  0x91   : > { %1671 = vmatprep.mubr.bf16.mxu1 %v3838_v12  ;;  %2720 = vmatpush3.bf16.msra.mxu1 %v3202_v0 }
  0x92   : > { %2721 = vmatprep.subr.bf16.mxu1 %v3203_v1 }
  0x93   : > { %1683 = vmatpush1.bf16.msra.mxu0 %v3106_v14  ;;  %v3208_v14 = vld [vmem:[%s4220_s2 + $0x18] sm:$0xff]  }
  0x94   : > { %1684 = vmatprep.subr.bf16.mxu0 %v3113_v15  ;;  %v3189_v15 = vld [vmem:[%s4219_s1 + $0x550] ss:$24 sps:$4 sm:$0xff]  }
  0x95   : > { %2722 = vmatpush3.bf16.msra.mxu1 %v3204_v3 }
  0x96   : > { %1570 = vmatmul.mubr.bf16.gmra.mrb[4].mxu0 %v3856_v17  ;;  %2723 = vmatprep.subr.bf16.mxu1 %v3205_v6 }
  0x97   : > { %1672 = vmatmul.mubr.bf16.gmra.mrb[4].mxu1 %v3856_v17  ;;  %1685 = vmatpush1.bf16.msra.mxu0 %v3111_v16  ;;  %v3209_v16 = vld [vmem:[%s4220_s2 + $0x60] sm:$0xff]  }
  0x98   : > { %1712 = vmatprep.mubr.bf16.mxu0 %v3562_v47  ;;  %1686 = vmatprep.subr.bf16.mxu0 %v3116_v18  ;;  %v3123_v47 = vld [vmem:[%s4219_s1 + $0x130] ss:$24 sps:$4 sm:$0xff]   ;;  %v3194_v18 = vld [vmem:[%s4219_s1 + $0x584] ss:$24 sps:$4 sm:$0xff]  }
  0x99   : > { %2724 = vmatpush3.bf16.msra.mxu1 %v3206_v8 }
  0x9a   : > { %2725 = vmatprep.subr.bf16.mxu1 %v3207_v11 }
  0x9b   : > { %1687 = vmatpush1.bf16.msra.mxu0 %v3114_v19  ;;  %v3210_v19 = vld [vmem:[%s4220_s2 + $0x20] sm:$0xff]  }
  0x9c   : > { %1688 = vmatprep.subr.bf16.mxu0 %v3119_v20  ;;  %v3192_v20 = vld [vmem:[%s4219_s1 + $0x580] ss:$24 sps:$4 sm:$0xff]  }
  0x9d   : > { %2726 = vmatpush3.bf16.msra.mxu1 %v3208_v14 }
  0x9e   : > { %2727 = vmatprep.subr.bf16.mxu1 %v3209_v16 }
  0x9f   : > { %1689 = vmatpush1.bf16.msra.mxu0 %v3117_v21  ;;  %v3211_v21 = vld [vmem:[%s4220_s2 + $0x68] sm:$0xff]  }
  0xa0   : > { %1690 = vmatprep.subr.bf16.mxu0 %v3122_v22  ;;  %v3197_v22 = vld [vmem:[%s4219_s1 + $0x5b4] ss:$24 sps:$4 sm:$0xff]  }
  0xa1   : > { %2728 = vmatpush3.bf16.msra.mxu1 %v3210_v19 }
  0xa2   : > { %2729 = vmatprep.subr.bf16.mxu1 %v3211_v21 }
  0xa3   : > { %1691 = vmatpush1.bf16.msra.mxu0 %v3120_v23  ;;  %v3212_v23 = vld [vmem:[%s4220_s2 + $0x28] sm:$0xff]  }
  0xa4   : > { %1692 = vmatprep.subr.bf16.mxu0 %v3125_v24  ;;  %v3195_v24 = vld [vmem:[%s4219_s1 + $0x5b0] ss:$24 sps:$4 sm:$0xff]  }
  0xa5   : > { %2730 = vmatpush3.bf16.msra.mxu1 %v3212_v23  ;;  %v3219_v23 = vld [vmem:[%s4220_s2 + $0x90] sm:$0xff]  }
  0xa7   : > { %1693 = vmatpush1.bf16.msra.mxu0 %v3123_v47  ;;  %v3200_v47 = vld [vmem:[%s4219_s1 + $0x5e4] ss:$24 sps:$4 sm:$0xff]  }
  0xa8   : > { %1694 = vmatprep.subr.bf16.mxu0 %v3128_v26  ;;  %v3198_v26 = vld [vmem:[%s4219_s1 + $0x5e0] ss:$24 sps:$4 sm:$0xff]  }
  0xab   : > { %1695 = vmatpush1.bf16.msra.mxu0 %v3126_v28  ;;  %v3213_v28 = vld [vmem:[%s4220_s2 + $0x70] sm:$0xff]  }
  0xac   : > { %1696 = vmatprep.subr.bf16.mxu0 %v3131_v29  ;;  %2731 = vmatprep.subr.bf16.mxu1 %v3213_v28  ;;  %v3221_v28 = vld [vmem:[%s4220_s2 + $0xa0] sm:$0xff]  }
  0xaf   : > { %1697 = vmatpush1.bf16.msra.mxu0 %v3129_v30 }
  0xb0   : > { %1698 = vmatprep.subr.bf16.mxu0 %v3134_v31  ;;  %v3214_v31 = vld [vmem:[%s4220_s2 + $0x30] sm:$0xff]  }
  0xb1   : > { %2732 = vmatpush3.bf16.msra.mxu1 %v3214_v31  ;;  %v3224_v31 = vld [vmem:[%s4220_s2 + $0xb8] sm:$0xff]  }
  0xb3   : > { %1699 = vmatpush1.bf16.msra.mxu0 %v3132_v32 }
  0xb4   : > { %1700 = vmatprep.subr.bf16.mxu0 %v3137_v34 }
  0xb7   : > { %1701 = vmatpush1.bf16.msra.mxu0 %v3135_v35 }
  0xb8   : > { %1702 = vmatprep.subr.bf16.mxu0 %v3140_v36 }
  0xbb   : > { %1703 = vmatpush1.bf16.msra.mxu0 %v3138_v37 }
  0xbc   : > { %1704 = vmatprep.subr.bf16.mxu0 %v3143_v38 }
  0xbf   : > { %1705 = vmatpush1.bf16.msra.mxu0 %v3141_v39  ;;  %v3215_v39 = vld [vmem:[%s4220_s2 + $0x78] sm:$0xff]  }
  0xc0   : > { %1706 = vmatprep.subr.bf16.mxu0 %v3146_v40  ;;  %2733 = vmatprep.subr.bf16.mxu1 %v3215_v39  ;;  %v3233_v39 = vld [vmem:[%s4223_s5] sm:$0xff]  }
  0xc3   : > { %1707 = vmatpush1.bf16.msra.mxu0 %v3144_v41 }
  0xc4   : > { %1708 = vmatprep.subr.bf16.mxu0 %v3149_v42  ;;  %v3216_v42 = vld [vmem:[%s4220_s2 + $0x38] sm:$0xff]  }
  0xc5   : > { %2734 = vmatpush3.bf16.msra.mxu1 %v3216_v42 }
  0xc7   : > { %1709 = vmatpush1.bf16.msra.mxu0 %v3147_v43 }
  0xc8   : > { %1710 = vmatprep.subr.bf16.mxu0 %v3152_v44  ;;  %v3217_v44 = vld [vmem:[%s4220_s2 + $0x80] sm:$0xff]  }
  0xc9   : > { %2777 = vmatprep.subr.bf16.mxu1 %v3217_v44 }
  0xcb   : > { %1711 = vmatpush1.bf16.msra.mxu0 %v3150_v45 }
  0xcc   : > { %1731 = vmatprep.subr.bf16.mxu0 %v3155_v46 }
  0xce   : > { %1713 = vmatmul.mubr.bf16.vlgmr.msra.gmra.mrb[8].mxu0 %v3630_v5  ;;  %v3164_v5 = vld [vmem:[%s4219_s1 + $0x3a4] ss:$24 sps:$4 sm:$0xff]  }
  0xcf   : > { %1732 = vmatpush1.bf16.msra.mxu0 %v3153_v48  ;;  %1722 = vmatprep.mubr.bf16.mxu0 %v3689_v25  ;;  %v3162_v25 = vld [vmem:[%s4219_s1 + $0x3a0] ss:$24 sps:$4 sm:$0xff]  }
  0xd0   : > { %1733 = vmatprep.subr.bf16.mxu0 %v3158_v49 }
  0xd3   : > { %1734 = vmatpush1.bf16.msra.mxu0 %v3156_v50 }
  0xd4   : > { %1735 = vmatprep.subr.bf16.mxu0 %v3161_v51 }
  0xd6   : > { %1723 = vmatmul.mubr.bf16.gmra.mrb[12].mxu0 %v3694_v27  ;;  %v3170_v27 = vld [vmem:[%s4219_s1 + $0x404] ss:$24 sps:$4 sm:$0xff]  }
  0xd7   : > { %1736 = vmatpush1.bf16.msra.mxu0 %v3159_v52  ;;  %1763 = vmatprep.mubr.bf16.mxu0 %v3716_v33  ;;  %v3168_v33 = vld [vmem:[%s4219_s1 + $0x400] ss:$24 sps:$4 sm:$0xff]  }
  0xd8   : > { %1737 = vmatprep.subr.bf16.mxu0 %v3164_v5 }
  0xdb   : > { %1738 = vmatpush1.bf16.msra.mxu0 %v3162_v25 }
  0xdc   : > { %1739 = vmatprep.subr.bf16.mxu0 %v3167_v53 }
  0xdf   : > { %1740 = vmatpush1.bf16.msra.mxu0 %v3165_v54 }
  0xe0   : > { %1741 = vmatprep.subr.bf16.mxu0 %v3170_v27 }
  0xe3   : > { %1742 = vmatpush1.bf16.msra.mxu0 %v3168_v33 }
  0xe4   : > { %1743 = vmatprep.subr.bf16.mxu0 %v3173_v55 }
  0xe7   : > { %1744 = vmatpush1.bf16.msra.mxu0 %v3171_v56 }
  0xe8   : > { %1745 = vmatprep.subr.bf16.mxu0 %v3176_v57 }
  0xeb   : > { %1746 = vmatpush1.bf16.msra.mxu0 %v3174_v58 }
  0xec   : > { %1747 = vmatprep.subr.bf16.mxu0 %v3179_v59 }
  0xef   : > { %1748 = vmatpush1.bf16.msra.mxu0 %v3177_v60 }
  0xf0   : > { %1749 = vmatprep.subr.bf16.mxu0 %v3182_v61 }
  0xf3   : > { %1750 = vmatpush1.bf16.msra.mxu0 %v3180_v62 }
  0xf4   : > { %1751 = vmatprep.subr.bf16.mxu0 %v3185_v2 }
  0xf7   : > { %1752 = vmatpush1.bf16.msra.mxu0 %v3183_v4 }
  0xf8   : > { %1753 = vmatprep.subr.bf16.mxu0 %v3188_v7 }
  0xfb   : > { %1754 = vmatpush1.bf16.msra.mxu0 %v3186_v9  ;;  %v3218_v9 = vld [vmem:[%s4220_s2 + $0x88] sm:$0xff]  }
  0xfc   : > { %1755 = vmatprep.subr.bf16.mxu0 %v3191_v13 }
  0xff   : > { %1756 = vmatpush1.bf16.msra.mxu0 %v3189_v15 }
 0x100   : > { %1757 = vmatprep.subr.bf16.mxu0 %v3194_v18 }
 0x103   : > { %1758 = vmatpush1.bf16.msra.mxu0 %v3192_v20 }
 0x104   : > { %1759 = vmatprep.subr.bf16.mxu0 %v3197_v22 }
 0x107   : > { %1760 = vmatpush1.bf16.msra.mxu0 %v3195_v24 }
 0x108   : > { %1761 = vmatprep.subr.bf16.mxu0 %v3200_v47 }
 0x10b   : > { %1762 = vmatpush1.bf16.msra.mxu0 %v3198_v26  ;;  %v3220_v26 = vld [vmem:[%s4220_s2 + $0x98] sm:$0xff]  }
 0x10e   : > { %1764 = vmatmul.mubr.bf16.vlgmr.msra.gmra.mrb[8].mxu0 %v3833_v10 }
 0x10f   : > { %1773 = vmatprep.mubr.bf16.mxu0 %v3838_v12 }
 0x116   : > { %1774 = vmatmul.mubr.bf16.gmra.mrb[12].mxu0 %v3856_v17 }
 0x161   : > { %v1561_v29 = vpop.f32.mrb[0].mxu0 }
 0x162   : > { %v1663_v30 = vpop.f32.mrb[0].mxu1  ;;  %v1782_v32 = vmul.f32 %v1561_v29, %v1561_v29  ;;  %v1563_v34 = vpop.f32.mrb[1].mxu0  ;;  %v3222_v29 = vld [vmem:[%s4220_s2 + $0xa8] sm:$0xff]  }
 0x163   : > { %v1665_v35 = vpop.f32.mrb[1].mxu1  ;;  %v1565_v10 = vpop.f32.mrb[2].mxu0  ;;  %v1783_v55 = vmul.f32 %v1563_v34, %v1563_v34  ;;  %v1784_v58 = vmul.f32 %v1663_v30, %v1663_v30  ;;  %v3223_v30 = vld [vmem:[%s4220_s2 + $0xb0] sm:$0xff]   ;;  %v3225_v34 = vld [vmem:[%s4221_s3] sm:$0xff]  }
 0x164   : > { %v1791_v36 = vmul.f32 %v1665_v35, %v1665_v35  ;;  %v1667_v37 = vpop.f32.mrb[2].mxu1  ;;  %v1785_v12 = vmul.f32 %v1565_v10, %v1565_v10  ;;  %v1567_v17 = vpop.f32.mrb[3].mxu0  ;;  %v3226_v35 = vld [vmem:[%s4221_s3 + $0x8] sm:$0xff]   ;;  %v3228_v10 = vld [vmem:[%s4221_s3 + $0x18] sm:$0xff]  }
 0x165   : > { %v1669_v38 = vpop.f32.mrb[3].mxu1  ;;  %v1786_v61 = vmul.f32 %v1567_v17, %v1567_v17  ;;  %v1787_v1 = vmul.f32 %v1667_v37, %v1667_v37  ;;  %v3229_v37 = vld [vmem:[%s4221_s3 + $0x20] sm:$0xff]   ;;  %v3231_v17 = vld [vmem:[%s4221_s3 + $0x30] sm:$0xff]  }
 0x166   : > { %v1800_v40 = vadd.f32 %v1791_v36, %v1782_v32  ;;  %v1794_v41 = vmul.f32 %v1669_v38, %v1669_v38  ;;  %v3227_v36 = vld [vmem:[%s4221_s3 + $0x10] sm:$0xff]   ;;  %v3232_v38 = vld [vmem:[%s4221_s3 + $0x38] sm:$0xff]  }
 0x168   : > { %v1803_v43 = vadd.f32 %v1794_v41, %v1785_v12  ;;  %v3230_v12 = vld [vmem:[%s4221_s3 + $0x28] sm:$0xff]  }
 0x169   : > { %v1571_v46 = vpop.f32.mrb[4].mxu0 }
 0x16a   : > { %v1809_v45 = vpack.c.bf16 %v1803_v43, %v1800_v40  ;;  %v1673_v48 = vpop.f32.mrb[4].mxu1  ;;  %v1788_v49 = vmul.f32 %v1571_v46, %v1571_v46  ;;  %v1573_v50 = vpop.f32.mrb[5].mxu0 }
 0x16b   : > { %v1675_v51 = vpop.f32.mrb[5].mxu1  ;;  %v1575_v5 = vpop.f32.mrb[6].mxu0  ;;  %v1789_v13 = vmul.f32 %v1573_v50, %v1573_v50  ;;  %v1790_v16 = vmul.f32 %v1673_v48, %v1673_v48 }
 0x16c   : > { %v1797_v52 = vmul.f32 %v1675_v51, %v1675_v51  ;;  %v1677_v25 = vpop.f32.mrb[6].mxu1  ;;  %v1576_v53 = vpop.f32.mrb[7].mxu0 }
 0x16d   : > { %v1678_v54 = vpop.f32.mrb[7].mxu1 }
 0x16e   : > { %v1806_v27 = vadd.f32 %v1797_v52, %v1788_v49 }
 0x170   : > { %v1812_v47 = vpack.c.bf16 %v1806_v27, %v1806_v27 }
 0x1e1   : > { %v1765_v33 = vpop.f32.mrb[8].mxu0 }
 0x1e2   : > { %v1792_v56 = vmul.f32 %v1765_v33, %v1765_v33  ;;  %v1767_v57 = vpop.f32.mrb[9].mxu0 }
 0x1e3   : > { %v1793_v59 = vmul.f32 %v1767_v57, %v1767_v57  ;;  %v1769_v60 = vpop.f32.mrb[10].mxu0 }
 0x1e4   : > { %v1801_v62 = vadd.f32 %v1792_v56, %v1783_v55  ;;  %v1795_v63 = vmul.f32 %v1769_v60, %v1769_v60  ;;  %v1771_v0 = vpop.f32.mrb[11].mxu0 }
 0x1e5   : > { %v1802_v2 = vadd.f32 %v1793_v59, %v1784_v58  ;;  %v1796_v3 = vmul.f32 %v1771_v0, %v1771_v0 }
 0x1e6   : > { %v1804_v4 = vadd.f32 %v1795_v63, %v1786_v61 }
 0x1e7   : > { %v1805_v6 = vadd.f32 %v1796_v3, %v1787_v1  ;;  %v3235_v3 = vld [vmem:[%s4223_s5 + $0x10] sm:$0xff]  }
 0x1e8   : > { %v1810_v7 = vpack.c.bf16 %v1804_v4, %v1801_v62  ;;  %v3236_v4 = vld [vmem:[%s4223_s5 + $0x18] sm:$0xff]  }
 0x1e9   : > { %v1775_v8 = vpop.f32.mrb[12].mxu0  ;;  %v1811_v11 = vpack.c.bf16 %v1805_v6, %v1802_v2  ;;  %v3234_v2 = vld [vmem:[%s4223_s5 + $0x8] sm:$0xff]   ;;  %v3237_v6 = vld [vmem:[%s4223_s5 + $0x20] sm:$0xff]  }
 0x1ea   : > { %v1798_v14 = vmul.f32 %v1775_v8, %v1775_v8  ;;  %v1777_v15 = vpop.f32.mrb[13].mxu0  ;;  %2039 = vmatprep.mubr.bf16.mxu1 %v1810_v7  ;;  %v3238_v7 = vld [vmem:[%s4223_s5 + $0x28] sm:$0xff]   ;;  %v3239_v8 = vld [vmem:[%s4223_s5 + $0x30] sm:$0xff]  }
 0x1eb   : > { %v1799_v18 = vmul.f32 %v1777_v15, %v1777_v15  ;;  %v1779_v19 = vpop.f32.mrb[14].mxu0  ;;  %2040 = vmatmul.mubr.bf16.vlgmr.msra.gmra.mrb[8].mxu1 %v1809_v45 }
 0x1ec   : > { %v1807_v20 = vadd.f32 %v1798_v14, %v1789_v13  ;;  %2778 = vmatpush3.bf16.msra.mxu1 %v3217_v44  ;;  %v1780_v21 = vpop.f32.mrb[15].mxu0 }
 0x1ed   : > { %v1808_v22 = vadd.f32 %v1799_v18, %v1790_v16  ;;  %2779 = vmatprep.subr.bf16.mxu1 %v3218_v9 }
 0x1ee   : > { %v1813_v24 = vpack.c.bf16 %v1807_v20, %v1807_v20 }
 0x1ef   : > { %v1814_v32 = vpack.c.bf16 %v1808_v22, %v1808_v22 }
 0x1f0   : > { %2780 = vmatpush3.bf16.msra.mxu1 %v3218_v9  ;;  %2047 = vmatprep.mubr.bf16.mxu1 %v1813_v24  ;;  %v3240_v9 = vld [vmem:[%s4223_s5 + $0x38] sm:$0xff]  }
 0x1f1   : > { %2781 = vmatprep.subr.bf16.mxu1 %v3219_v23 }
 0x1f3   : > { %2048 = vmatmul.mubr.bf16.gmra.mrb[12].mxu1 %v1812_v47 }
 0x1f4   : > { %2782 = vmatpush3.bf16.msra.mxu1 %v3219_v23  ;;  %2793 = vmatprep.mubr.bf16.mxu1 %v1811_v11  ;;  %v2696_v11 = vld [vmem:[%s4222_s4] ss:$0 sm:$0xff] }
 0x1f5   : > { %2783 = vmatprep.subr.bf16.mxu1 %v3220_v26 }
 0x1f8   : > { %2784 = vmatpush3.bf16.msra.mxu1 %v3220_v26  ;;  %v2705_v26 = vld [vmem:[%s4224_s6] ss:$0 sm:$0xff] }
 0x1f9   : > { %2785 = vmatprep.subr.bf16.mxu1 %v3221_v28 }
 0x1fc   : > { %2786 = vmatpush3.bf16.msra.mxu1 %v3221_v28 }
 0x1fd   : > { %2787 = vmatprep.subr.bf16.mxu1 %v3222_v29 }
 0x200   : > { %2788 = vmatpush3.bf16.msra.mxu1 %v3222_v29 }
 0x201   : > { %2789 = vmatprep.subr.bf16.mxu1 %v3223_v30 }
 0x204   : > { %2790 = vmatpush3.bf16.msra.mxu1 %v3223_v30 }
 0x205   : > { %2791 = vmatprep.subr.bf16.mxu1 %v3224_v31 }
 0x208   : > { %2792 = vmatpush3.bf16.msra.mxu1 %v3224_v31 }
 0x209   : > { %2797 = vmatprep.subr.bf16.mxu1 %v3225_v34 }
 0x20b   : > { %2794 = vmatmul.mubr.bf16.vlgmr.msra.gmra.mrb[16].mxu1 %v1814_v32 }
 0x20c   : > { %2798 = vmatpush3.bf16.msra.mxu1 %v3225_v34 }
 0x20d   : > { %2799 = vmatprep.subr.bf16.mxu1 %v3226_v35 }
 0x210   : > { %2800 = vmatpush3.bf16.msra.mxu1 %v3226_v35 }
 0x211   : > { %2801 = vmatprep.subr.bf16.mxu1 %v3227_v36 }
 0x214   : > { %2802 = vmatpush3.bf16.msra.mxu1 %v3227_v36 }
 0x215   : > { %2803 = vmatprep.subr.bf16.mxu1 %v3228_v10 }
 0x218   : > { %2804 = vmatpush3.bf16.msra.mxu1 %v3228_v10 }
 0x219   : > { %2805 = vmatprep.subr.bf16.mxu1 %v3229_v37 }
 0x21c   : > { %2806 = vmatpush3.bf16.msra.mxu1 %v3229_v37 }
 0x21d   : > { %2807 = vmatprep.subr.bf16.mxu1 %v3230_v12 }
 0x220   : > { %2808 = vmatpush3.bf16.msra.mxu1 %v3230_v12 }
 0x221   : > { %2809 = vmatprep.subr.bf16.mxu1 %v3231_v17 }
 0x224   : > { %2810 = vmatpush3.bf16.msra.mxu1 %v3231_v17 }
 0x225   : > { %2811 = vmatprep.subr.bf16.mxu1 %v3232_v38 }
 0x228   : > { %2812 = vmatpush3.bf16.msra.mxu1 %v3232_v38 }
 0x229   : > { %2817 = vmatprep.subr.bf16.mxu1 %v3233_v39 }
 0x2be   : > { %v2735_v40 = vpop.f32.mrb[8].mxu1 }
 0x2bf   : > { %v2736_v41 = vpop.f32.mrb[9].mxu1 }
 0x2c0   : > { %v2737_v42 = vadd.f32 %v2736_v41, %v2735_v40  ;;  %v2738_v43 = vpop.f32.mrb[10].mxu1 }
 0x2c1   : > { %v2739_v44 = vpop.f32.mrb[11].mxu1 }
 0x2c2   : > { %v2740_v45 = vadd.f32 %v2739_v44, %v2738_v43 }
 0x2c6   : > { %v2741_v46 = vpop.f32.mrb[12].mxu1 }
 0x2c7   : > { %v2742_v48 = vpop.f32.mrb[13].mxu1 }
 0x2c8   : > { %v2743_v49 = vadd.f32 %v2742_v48, %v2741_v46  ;;  %v2744_v50 = vpop.f32.mrb[14].mxu1 }
 0x2c9   : > { %v2745_v51 = vpop.f32.mrb[15].mxu1 }
 0x2de   : > { %v2795_v52 = vpop.f32.mrb[16].mxu1 }
 0x2df   : > { %v2098_v5 = vadd.f32 %v2795_v52, %v2743_v49  ;;  %v2089_v25 = vpop.f32.mrb[17].mxu1 }
 0x2e0   : > { %v2090_v53 = vadd.f32 %v2737_v42, %v2089_v25  ;;  %v2796_v54 = vpop.f32.mrb[18].mxu1 }
 0x2e1   : > { %v2105_v27 = vmax.f32 %v2098_v5, 1e-10  ;;  %v2092_v33 = vpop.f32.mrb[19].mxu1 }
 0x2e2   : > { %v2103_v55 = vmax.f32 %v2090_v53, 1e-10  ;;  %v2093_v56 = vadd.f32 %v2740_v45, %v2092_v33 }
 0x2e3   : > { %3241 = vlog2.f32 %v2105_v27 }
 0x2e4   : > { %3243 = vlog2.f32 %v2103_v55  ;;  %v2104_v57 = vmax.f32 %v2093_v56, 1e-10 }
 0x2e6   : > { %3245 = vlog2.f32 %v2104_v57 }
 0x2ed   : > { %v3242_v58 = vpop.eup %3241 }
 0x2ee   : > { %v3244_v59 = vpop.eup %3243  ;;  %v2111_v61 = vmul.f32 0.6931472, %v3242_v58 }
 0x2ef   : > { %v2107_v62 = vmul.f32 0.6931472, %v3244_v59 }
 0x2f0   : > { %v3246_v60 = vpop.eup %3245  ;;  %v2113_v1 = vpack.c.bf16 %v2111_v61, %v2111_v61 }
 0x2f1   : > { %v2109_v63 = vmul.f32 0.6931472, %v3246_v60 }
 0x2f3   : > { %v2112_v0 = vpack.c.bf16 %v2109_v63, %v2107_v62 }
 0x2f5   : > { %2813 = vmatprep.mubr.bf16.mxu1 %v2112_v0 }
 0x2f6   : > { %2814 = vmatmul.mubr.bf16.vlgmr.msra.gmra.mrb[20].mxu1 %v2113_v1 }
 0x2f7   : > { %2818 = vmatpush3.bf16.msra.mxu1 %v3233_v39 }
 0x2f8   : > { %2819 = vmatprep.subr.bf16.mxu1 %v3234_v2 }
 0x2fb   : > { %2820 = vmatpush3.bf16.msra.mxu1 %v3234_v2 }
 0x2fc   : > { %2821 = vmatprep.subr.bf16.mxu1 %v3235_v3 }
 0x2ff   : > { %2822 = vmatpush3.bf16.msra.mxu1 %v3235_v3 }
 0x300   : > { %2823 = vmatprep.subr.bf16.mxu1 %v3236_v4 }
 0x303   : > { %2824 = vmatpush3.bf16.msra.mxu1 %v3236_v4 }
 0x304   : > { %2825 = vmatprep.subr.bf16.mxu1 %v3237_v6 }
 0x307   : > { %2826 = vmatpush3.bf16.msra.mxu1 %v3237_v6 }
 0x308   : > { %2827 = vmatprep.subr.bf16.mxu1 %v3238_v7 }
 0x30b   : > { %2828 = vmatpush3.bf16.msra.mxu1 %v3238_v7 }
 0x30c   : > { %2829 = vmatprep.subr.bf16.mxu1 %v3239_v8 }
 0x30f   : > { %2830 = vmatpush3.bf16.msra.mxu1 %v3239_v8 }
 0x310   : > { %2831 = vmatprep.subr.bf16.mxu1 %v3240_v9 }
 0x313   : > { %2832 = vmatpush3.bf16.msra.mxu1 %v3240_v9 }
 0x3c9   : > { %v2815_v13 = vpop.f32.mrb[20].mxu1 }
 0x3ca   : > { %v2228_v14 = vadd.f32 %v2815_v13, %v2696_v11  ;;  %v2219_v15 = vpop.f32.mrb[21].mxu1 }
 0x3cb   : > { %v2220_v16 = vadd.f32 %v2696_v11, %v2219_v15  ;;  %v2816_v18 = vpop.f32.mrb[22].mxu1 }
 0x3cc   : > { %v2222_v19 = vpop.f32.mrb[23].mxu1  ;;  %v2235_v21 = vmax.f32 %v2228_v14, 0.0 }
 0x3cd   : > { %v2223_v20 = vadd.f32 %v2696_v11, %v2222_v19  ;;  %v2233_v22 = vmax.f32 %v2220_v16, 0.0 }
 0x3ce   : > { %v2237_v47 = vpack.c.bf16 %v2235_v21, %v2235_v21 }
 0x3cf   : > { %v2234_v23 = vmax.f32 %v2223_v20, 0.0 }
 0x3d1   : > { %v2236_v24 = vpack.c.bf16 %v2234_v23, %v2233_v22 }
 0x3d3   : > { %2833 = vmatprep.mubr.bf16.mxu1 %v2236_v24 }
 0x3d4   : > { %2834 = vmatmul.mubr.bf16.vlgmr.msra.gmra.mrb[24].mxu1 %v2237_v47 }
 0x4a7   : > { %v2835_v28 = vpop.f32.mrb[24].mxu1 }
 0x4a8   : > { %v2352_v29 = vadd.f32 %v2835_v28, %v2705_v26  ;;  %v2343_v30 = vpop.f32.mrb[25].mxu1 }
 0x4a9   : > { %v2344_v31 = vadd.f32 %v2705_v26, %v2343_v30  ;;  %v2836_v32 = vpop.f32.mrb[26].mxu1 }
 0x4aa   : > { %2361 = vmax.xlane.f32.xlu1 %v2352_v29  ;;  %v2346_v34 = vpop.f32.mrb[27].mxu1 }
 0x4ab   : > { %2357 = vmax.xlane.f32.xlu0 %v2344_v31  ;;  %v2347_v35 = vadd.f32 %v2705_v26, %v2346_v34 }
 0x4af   : > { %2359 = vmax.xlane.f32.xlu0 %v2347_v35 }
 0x537   : > { %v2362_v36 = vpop.xlane.xlu1 %2361 }
 0x538   : > { %v2365_v10 = vsub.f32 %v2352_v29, %v2362_v36  ;;  %v2358_v37 = vpop.xlane.xlu0 %2357 }
 0x539   : > { %v2363_v12 = vsub.f32 %v2344_v31, %v2358_v37 }
 0x53a   : > { %v2370_v38 = vmul.f32 1.442695, %v2365_v10 }
 0x53b   : > { %v2366_v17 = vmul.f32 1.442695, %v2363_v12 }
 0x53c   : > { %v2360_v39 = vpop.xlane.xlu0 %2359 }
 0x53d   : > { %3247 = vpow2.f32 %v2366_v17  ;;  %v2364_v40 = vsub.f32 %v2347_v35, %v2360_v39 }
 0x53e   : > { %3249 = vpow2.f32 %v2370_v38 }
 0x53f   : > { %v2368_v41 = vmul.f32 1.442695, %v2364_v40 }
 0x541   : > { %3251 = vpow2.f32 %v2368_v41 }
 0x547   : > { %v3248_v42 = vpop.eup %3247 }
 0x548   : > { %2372 = vadd.xlane.f32.xlu1 %v3248_v42  ;;  %v3250_v43 = vpop.eup %3249 }
 0x54b   : > { %v3252_v44 = vpop.eup %3251 }
 0x54c   : > { %2376 = vadd.xlane.f32.xlu1 %v3250_v43  ;;  %2374 = vadd.xlane.f32.xlu0 %v3252_v44 }
 0x5d5   : > { %v2373_v45 = vpop.xlane.xlu1 %2372 }
 0x5d6   : > { %3253 = vlog2.f32 %v2373_v45 }
 0x5d9   : > { %v2377_v46 = vpop.xlane.xlu1 %2376  ;;  %v2375_v48 = vpop.xlane.xlu0 %2374 }
 0x5da   : > { %3255 = vlog2.f32 %v2377_v46 }
 0x5db   : > { %3257 = vlog2.f32 %v2375_v48 }
 0x5e0   : > { %v3254_v49 = vpop.eup %3253 }
 0x5e1   : > { %v2379_v50 = vmul.f32 0.6931472, %v3254_v49 }
 0x5e3   : > { %v2384_v51 = vsub.f32 %v2363_v12, %v2379_v50 }
 0x5e4   : > { %v3256_v52 = vpop.eup %3255 }
 0x5e5   : > { %v3258_v5 = vpop.eup %3257  ;;  %2387 = vst [vmem:[%s274_s13] sm:$0xff] %v2384_v51  ;;  %v2383_v25 = vmul.f32 0.6931472, %v3256_v52 }
 0x5e6   : > { %v2381_v53 = vmul.f32 0.6931472, %v3258_v5 }
 0x5e7   : > { %v2386_v54 = vsub.f32 %v2365_v10, %v2383_v25 }
 0x5e8   : > { %v2385_v27 = vsub.f32 %v2364_v40, %v2381_v53 }
 0x5e9   : > { %2389 = vst [vmem:[%s274_s13 + $0x10] sm:$0xff] %v2386_v54 }
 0x5ea   : > { %2388 = vst [vmem:[%s274_s13 + $0x8] sm:$0xff] %v2385_v27 }
 0x5eb   : > { %3272 = shalt.err (!%p3269_p3)
}
 0x5ec   : > { %s3273_s22 = scalar_lea.hbm %s4173_s18, 384  ;;  %s3277_s17 = scalar_lea.hbm %s4225_s7, 768 }
 0x5ed   : > { %p3274_p4 = scmp.ne.s32.totalorder %s4173_s18, %s3273_s22  ;;  %p3278_p9 = scmp.lt.u32.totalorder %s4173_s18, %s4225_s7 }
 0x5ee   : > { %p3279_p10 = scmp.lt.u32.totalorder %s3277_s17, %s3273_s22  ;;  %p3281_p12 = scmp.lt.u32.totalorder %s3273_s22, %s4173_s18 }
 0x5ef   : > { %p3275_p7 = pnand %p3274_p4, %p3404_p5 }
 0x5f0   : > { %p3280_p11 = por %p3279_p10, %p3278_p9 }
 0x5f1   : > { %p3276_p8 = pneg %p3275_p7 }
 0x5f2   : > { %p3282_p13 = por %p3281_p12, %p3280_p11 }
 0x5f4   : > { %p3283_p0 = pnand %p3282_p13, %p3276_p8 }
 0x5f6   : > { %3286 = shalt.err (!%p3283_p0)
}
 0x5f7   : > { %s3324_s16 = smov 128   ;;  %s3325_s8 = smov 8  }
 0x5f8   : > { %2862 = dma.vmem_to_hbm [thread:$0]  (%p3404_p5), %s4175_s14, 384, %s4173_s18, %s4177_s28, %s3324_s16, %s3324_s16, %s3325_s8  }
 0x5f9 PF: > { %p2868_p1 = scmp.ge.s32.totalorder %s3321_s27, 2  ;;  %s2419_s15 = sand.u32 1, %s3309_s24  }
 0x5fa   : > { %s2420_s19 = scalar_lea.sflag [#allocation3], %s2419_s15 }
 0x5fb   : > { %p2865_p2 = pnand %p2868_p1, %p3408_p6 }
 0x5fd   : > { %3304 = dma.done.wait (!%p2865_p2), %s2420_s19, 384  }
 0x5fe   : > { %3306 = vsyncadd (!%p2865_p2), %s2420_s19, 4294966912  ;;  %p17_p3 = scmp.ge.s32.totalorder %s3391_s30, 4   ;;  %s4228_s24 = smov %s3313_s25 }
 0x5ff   : > { %s4229_s25 = smov %s3317_s26  ;;  %s4230_s26 = smov %s3402_s10 }
 0x600   : > { %s4231_s27 = smov %s3391_s30  ;;  %19 = sbr.rel (!%p17_p3) target bundleno = 3 (0x3), region = 83 }
 0x607   :  { %2425 = vsyncpa [#allocation3], 1 }
 0x608   :  { %2427 = vsyncpa [#allocation3 + $0x1], 1 }

</bundles_post_ra>
